<compile_context>
chip_gen: v5e
topology: v5e:2x2
jax: 0.10.0
libtpu: 0.0.40
codegen_flags: <defaults>
</compile_context>

<pallas_src>
import jax
import jax.numpy as jnp
import numpy as np
from jax.experimental import pallas as pl
from jax.experimental.pallas import tpu as pltpu


def _round_up(x, m):
    return (x + m - 1) // m * m


def _cdiv(a, b):
    return (a + b - 1) // b


def _vmem_limit_bytes():
    """Pick a scoped-VMEM limit from the detected part (v5e/v6e 128 MiB, v7x 64 MiB)."""
    try:
        info = pltpu.get_tpu_info()
        phys = int(getattr(info, "vmem_capacity_bytes", 0) or 0) or (64 << 20)
    except Exception:
        phys = 64 << 20
    return max(32 << 20, min(phys * 3 // 4, 112 << 20))


# ----------------------------------------------------------------------------
# Pallas kernel: in-kernel im2col + one K-fused MXU matmul + folded-BN bias
# + [residual] + LeakyReLU on a lane-dense (Cp, tm) output tile.
# ----------------------------------------------------------------------------
def _make_kernel(tap_offsets, c0, tm, cin_r, k_true, k_pad, alpha, add_residual):
    def kernel(w_ref, b_ref, xa_ref, xb_ref, *rest):
        if add_residual:
            res_ref, out_ref, xwin_ref, patches_ref = rest
        else:
            out_ref, xwin_ref, patches_ref = rest

        # Sliding activation window for this M-tile: frame cols [i*tm, (i+2)*tm).
        xwin_ref[:, :tm] = xa_ref[...]
        xwin_ref[:, tm:] = xb_ref[...]

        # In-kernel im2col: 27 static lane-shifted views of the window become the
        # rows of the patch matrix (tap-major, channel-minor; matches the folded
        # weight layout).  Pad rows multiply against zero weight columns.
        for t, d in enumerate(tap_offsets):
            patches_ref[t * cin_r:(t + 1) * cin_r, :] = xwin_ref[:, c0 + d:c0 + d + tm]
        if k_pad:
            patches_ref[k_true:, :] = jnp.zeros((k_pad, tm), dtype=patches_ref.dtype)

        # Single K-fused MXU matmul (BN scale pre-folded into w), f32 accumulate.
        acc = jnp.dot(w_ref[...], patches_ref[...], preferred_element_type=jnp.float32)

        out = acc + b_ref[...]                              # folded-BN bias
        if add_residual:
            out = out + res_ref[...].astype(jnp.float32)    # identity shortcut
        out_ref[...] = jnp.where(out >= 0.0, out, alpha * out).astype(out_ref.dtype)

    return kernel


# ----------------------------------------------------------------------------
# One conv3x3x3(stride=1,pad=1) + folded-BN + (residual) + LeakyReLU stage.
#
# x_pf_flat:        (Cin, M_frame) activation on the zero-padded spatial frame
#                   (N, D+2, H+2, W+2), channel-first, flattened.  Frame
#                   padding positions must already hold zeros.
# residual_pf_flat: optional (Cres, M_frame) shortcut in the same layout.
# returns:          (Cout, M_frame) on the same frame; columns at frame-padding
#                   positions hold garbage (callers mask / slice them away).
# ----------------------------------------------------------------------------
def _conv_bn_act(x_pf_flat, w_oidhw, scale, bias, alpha, spatial, *,
                 residual_pf_flat=None, compute_dtype=jnp.bfloat16,
                 out_dtype=jnp.float32, vmem_limit=None):
    N, D, H, W = spatial
    Dp, Hp, Wp = D + 2, H + 2, W + 2
    Mf = N * Dp * Hp * Wp
    Cin = x_pf_flat.shape[0]
    Cout = w_oidhw.shape[0]
    assert x_pf_flat.shape[1] == Mf
    assert w_oidhw.shape[1] == Cin

    Cin_r = _round_up(Cin, 8)          # sublane-aligned per-tap channel block
    Ktrue = 27 * Cin_r
    Kp = _round_up(Ktrue, 128)
    Cp = _round_up(Cout, 8)

    # Max |column shift| of a 3x3x3 tap on the flattened padded frame, and the
    # (static) window origin == left zero pre-pad of the streamed array.
    off = Hp * Wp + Wp + 1
    c0 = _round_up(off, 128)

    # ---- adaptive M-tile / VMEM budget (no hard-coded tm or 32 MiB) ----
    if vmem_limit is None:
        vmem_limit = _vmem_limit_bytes()
    in_bytes = jnp.dtype(compute_dtype).itemsize
    out_bytes = jnp.dtype(out_dtype).itemsize
    min_tm = 2 * c0                    # the 2*tm window must cover tm + 2*off columns
    tm = max(min_tm, 1024 if vmem_limit >= (96 << 20) else 512)
    tm = _round_up(tm, 128)

    def _vmem_est(t):
        stream = 2 * (2 * Cin_r * t * in_bytes)       # two x blocks, double-buffered
        stream += 2 * Cp * t * out_bytes              # output tile, double-buffered
        if residual_pf_flat is not None:
            stream += 2 * Cp * t * in_bytes
        resident = 2 * (Cp * Kp + Cp) * in_bytes      # weights + bias
        temps = (2 * Cin_r * t + Kp * t) * in_bytes + Cp * t * 4
        return stream + resident + temps

    while tm > min_tm and _vmem_est(tm) > int(vmem_limit * 0.55):
        tm -= 128
    tm = max(tm, min_tm)
    # TODO(synk): if even min_tm overflows (huge Cin or H*W), tile K instead.

    n_tiles = _cdiv(Mf, tm)
    if n_tiles < 2 and Mf > min_tm:    # keep both v7x TensorCores busy
        tm = max(min_tm, _round_up(_cdiv(Mf, 2), 128))
        n_tiles = _cdiv(Mf, tm)
    Mo = n_tiles * tm
    Wtot = (n_tiles + 1) * tm          # tile i reads window blocks i and i+1

    # ---- weight / bias prep (XLA, once): fold BN scale, pad, cast ----
    w_k = jnp.transpose(w_oidhw, (0, 2, 3, 4, 1))                    # (Cout,3,3,3,Cin)
    w_k = jnp.pad(w_k, ((0, 0), (0, 0), (0, 0), (0, 0), (0, Cin_r - Cin)))
    wmat = w_k.reshape(Cout, Ktrue) * scale.astype(jnp.float32)[:, None]
    wmat = jnp.pad(wmat, ((0, Cp - Cout), (0, Kp - Ktrue))).astype(compute_dtype)
    bias_p = jnp.pad(bias.astype(jnp.float32), (0, Cp - Cout)).reshape(Cp, 1)

    # ---- activation stream: [c0 zero cols | padded frame | zero tail] ----
    xs = jnp.pad(x_pf_flat.astype(compute_dtype),
                 ((0, Cin_r - Cin), (c0, Wtot - c0 - Mf)))

    # Tap offsets in (kd, kh, kw) order -- must match the weight column order.
    tap_offsets = [(kd - 1) * Hp * Wp + (kh - 1) * Wp + (kw - 1)
                   for kd in range(3) for kh in range(3) for kw in range(3)]

    inputs = [wmat, bias_p, xs, xs]
    in_specs = [
        pl.BlockSpec((Cp, Kp), lambda i: (0, 0)),         # resident folded weights
        pl.BlockSpec((Cp, 1), lambda i: (0, 0)),          # resident BN bias
        pl.BlockSpec((Cin_r, tm), lambda i: (0, i)),      # window block i
        pl.BlockSpec((Cin_r, tm), lambda i: (0, i + 1)),  # window block i+1 (halo)
    ]
    add_res = residual_pf_flat is not None
    if add_res:
        res = jnp.pad(residual_pf_flat.astype(compute_dtype),
                      ((0, Cp - residual_pf_flat.shape[0]), (0, Mo - Mf)))
        inputs.append(res)
        in_specs.append(pl.BlockSpec((Cp, tm), lambda i: (0, i)))

    kernel = _make_kernel(tap_offsets, c0, tm, Cin_r, Ktrue, Kp - Ktrue,
                          float(alpha), add_res)

    out = pl.pallas_call(
        kernel,
        out_shape=jax.ShapeDtypeStruct((Cp, Mo), out_dtype),
        grid_spec=pltpu.PrefetchScalarGridSpec(
            num_scalar_prefetch=0,
            grid=(n_tiles,),
            in_specs=in_specs,
            out_specs=pl.BlockSpec((Cp, tm), lambda i: (0, i)),
            scratch_shapes=[
                pltpu.VMEM((Cin_r, 2 * tm), compute_dtype),   # assembled window
                pltpu.VMEM((Kp, tm), compute_dtype),          # im2col patch tile
            ],
        ),
        compiler_params=pltpu.CompilerParams(
            dimension_semantics=("parallel",),
            vmem_limit_bytes=int(vmem_limit),
        ),
    )(*inputs)

    return out[:Cout, :Mf]


# ----------------------------------------------------------------------------
# BasicBlock forward (stride=1, downsample=None -> identity shortcut)
# ----------------------------------------------------------------------------
def basic_block_forward(x_ncdhw, params, lrelu_alpha, compute_dtype=jnp.bfloat16):
    # TODO(synk): stride > 1 and the optional `downsample` branch are not
    #             implemented (the reference configuration uses neither).
    N, C, D, H, W = x_ncdhw.shape
    planes = params["w1"].shape[0]
    assert params["w2"].shape[0] == planes
    assert C == planes, "identity shortcut requires in_planes == planes"
    Dp, Hp, Wp = D + 2, H + 2, W + 2
    Mf = N * Dp * Hp * Wp
    spatial = (N, D, H, W)
    vmem_limit = _vmem_limit_bytes()

    # Activation on the zero-padded spatial frame, channel-first, flattened.
    x_cf = jnp.transpose(x_ncdhw, (1, 0, 2, 3, 4)).astype(jnp.float32)
    x_pf = jnp.pad(x_cf, ((0, 0), (0, 0), (1, 1), (1, 1), (1, 1)))
    x_pf_flat = x_pf.reshape(C, Mf)

    # 1.0 at real voxels, 0.0 at frame-padding positions.
    interior = jnp.pad(jnp.ones((N, D, H, W), jnp.float32),
                       ((0, 0), (1, 1), (1, 1), (1, 1))).reshape(1, Mf)

    # Stage 1: lrelu(bn1(conv1(x))); intermediate stays in compute dtype (bf16).
    o1 = _conv_bn_act(x_pf_flat, params["w1"], params["scale1"], params["bias1"],
                      lrelu_alpha, spatial, compute_dtype=compute_dtype,
                      out_dtype=compute_dtype, vmem_limit=vmem_limit)
    # Re-zero frame padding: it is conv2's zero padding and also holds garbage
    # stage 1 produced at those columns.
    o1 = o1 * interior.astype(o1.dtype)

    # Stage 2: lrelu(bn2(conv2(o1)) + x)
    o2 = _conv_bn_act(o1, params["w2"], params["scale2"], params["bias2"],
                      lrelu_alpha, spatial, residual_pf_flat=x_pf_flat,
                      compute_dtype=compute_dtype, out_dtype=jnp.float32,
                      vmem_limit=vmem_limit)

    out = o2.reshape(planes, N, Dp, Hp, Wp)[:, :, 1:-1, 1:-1, 1:-1]
    return jnp.transpose(out, (1, 0, 2, 3, 4))


# ----------------------------------------------------------------------------
# Pure-JAX reference using lax.conv_general_dilated.
# ----------------------------------------------------------------------------
def _ref_forward(x, params, alpha):
    def conv(a, w):
        return jax.lax.conv_general_dilated(
            a, w, (1, 1, 1), ((1, 1), (1, 1), (1, 1)),
            dimension_numbers=("NCDHW", "OIDHW", "NCDHW"),
        )

    def bn(a, s, b):
        return a * s[None, :, None, None, None] + b[None, :, None, None, None]

    def lrelu(a):
        return jnp.where(a >= 0, a, alpha * a)

    out = lrelu(bn(conv(x, params["w1"]), params["scale1"], params["bias1"]))
    out = bn(conv(out, params["w2"]), params["scale2"], params["bias2"])
    out = out + x
    return lrelu(out)


# ----------------------------------------------------------------------------
# Deterministic parameter setup (BatchNorm folded into scale/bias, eval mode)
# ----------------------------------------------------------------------------
def _make_params(key, in_planes, planes, eps=1e-5):
    ks = jax.random.split(key, 10)

    def bn_fold(kg, kb, km, kv):
        gamma = jax.random.uniform(kg, (planes,), jnp.float32, 0.5, 1.5)
        beta = 0.1 * jax.random.normal(kb, (planes,), jnp.float32)
        mean = 0.1 * jax.random.normal(km, (planes,), jnp.float32)
        var = jax.random.uniform(kv, (planes,), jnp.float32, 0.5, 1.5)
        scale = gamma / jnp.sqrt(var + eps)
        bias = beta - mean * scale
        return scale, bias

    w1 = 0.1 * jax.random.normal(ks[0], (planes, in_planes, 3, 3, 3), jnp.float32)
    w2 = 0.1 * jax.random.normal(ks[1], (planes, planes, 3, 3, 3), jnp.float32)
    s1, b1 = bn_fold(ks[2], ks[3], ks[4], ks[5])
    s2, b2 = bn_fold(ks[6], ks[7], ks[8], ks[9])
    return {"w1": w1, "scale1": s1, "bias1": b1,
            "w2": w2, "scale2": s2, "bias2": b2}


if __name__ == "__main__":
    key = jax.random.PRNGKey(0)
    k_x, k_p = jax.random.split(key)

    N, C, D, H, W = 2, 4, 8, 8, 8   # in_planes = planes = 4 (identity residual)
    lrelu_alpha = 0.1

    x = jax.random.normal(k_x, (N, C, D, H, W), jnp.float32)  # PyTorch NCDHW
    params = _make_params(k_p, in_planes=C, planes=C)

    ref = jax.block_until_ready(_ref_forward(x, params, lrelu_alpha))
    ref_np = np.asarray(ref)

    # Strict f32 path (test-only): near-exact check against the lax.conv reference.
    out_f32 = jax.block_until_ready(
        basic_block_forward(x, params, lrelu_alpha, compute_dtype=jnp.float32))
    if not np.allclose(np.asarray(out_f32), ref_np, rtol=2e-4, atol=2e-4):
        raise AssertionError("Pallas BasicBlock (f32) mismatch vs JAX reference")

    # Default perf path: bf16 streamed operands + bf16 intermediate, f32 accumulate.
    out_bf16 = jax.block_until_ready(basic_block_forward(x, params, lrelu_alpha))
    rel = np.linalg.norm(np.asarray(out_bf16) - ref_np) / np.linalg.norm(ref_np)
    if rel > 0.05:
        raise AssertionError(f"Pallas BasicBlock (bf16) relative L2 error too high: {rel}")

    print("KERNEL_OK")
</pallas_src>

<mosaic_0001>
module attributes {stable_mosaic.version = 11 : i64} {
  func.func @kernel(%arg0: i32, %arg1: memref<8x256xf32, #tpu.memory_space<vmem>>, %arg2: memref<8x1xf32, #tpu.memory_space<vmem>>, %arg3: memref<8x512xf32, #tpu.memory_space<vmem>>, %arg4: memref<8x512xf32, #tpu.memory_space<vmem>>, %arg5: memref<8x512xf32, #tpu.memory_space<vmem>>, %arg6: memref<8x1024xf32, #tpu.memory_space<vmem>>, %arg7: memref<256x512xf32, #tpu.memory_space<vmem>>) attributes {dimension_semantics = [#tpu.dimension_semantics<parallel>], iteration_bounds = array<i64: 4>, scalar_prefetch = 0 : i64, scratch_operands = 2 : i64, tpu.core_type = #tpu.core_type<tc>, window_params = [{pipeline_mode = #tpu.pipeline_mode<synchronous>, transform_indices = @transform_0, window_bounds = array<i64: 8, 256>}, {pipeline_mode = #tpu.pipeline_mode<synchronous>, transform_indices = @transform_1, window_bounds = array<i64: 8, 1>}, {transform_indices = @transform_2, window_bounds = array<i64: 8, 512>}, {transform_indices = @transform_3, window_bounds = array<i64: 8, 512>}, {transform_indices = @transform_4, window_bounds = array<i64: 8, 512>}]} {
    %c0 = arith.constant 0 : index
    %c0_0 = arith.constant 0 : index
    %0 = vector.load %arg3[%c0, %c0_0] : memref<8x512xf32, #tpu.memory_space<vmem>>, vector<8x512xf32>
    %c0_1 = arith.constant 0 : index
    %c0_2 = arith.constant 0 : index
    %1 = vector.load %arg6[%c0_1, %c0_2] : memref<8x1024xf32, #tpu.memory_space<vmem>>, vector<8x512xf32>
    tpu.vector_store %arg6[%c0_1, %c0_2], %0 {strides = array<i32>} : memref<8x1024xf32, #tpu.memory_space<vmem>>, vector<8x512xf32>,
    %c0_3 = arith.constant 0 : index
    %c0_4 = arith.constant 0 : index
    %2 = vector.load %arg4[%c0_3, %c0_4] : memref<8x512xf32, #tpu.memory_space<vmem>>, vector<8x512xf32>
    %c0_5 = arith.constant 0 : index
    %c512 = arith.constant 512 : index
    %3 = vector.load %arg6[%c0_5, %c512] : memref<8x1024xf32, #tpu.memory_space<vmem>>, vector<8x512xf32>
    tpu.vector_store %arg6[%c0_5, %c512], %2 {strides = array<i32>} : memref<8x1024xf32, #tpu.memory_space<vmem>>, vector<8x512xf32>,
    %c0_6 = arith.constant 0 : index
    %c17 = arith.constant 17 : index
    %4 = vector.load %arg6[%c0_6, %c17] : memref<8x1024xf32, #tpu.memory_space<vmem>>, vector<8x512xf32>
    %c0_7 = arith.constant 0 : index
    %c0_8 = arith.constant 0 : index
    %5 = vector.load %arg7[%c0_7, %c0_8] : memref<256x512xf32, #tpu.memory_space<vmem>>, vector<8x512xf32>
    tpu.vector_store %arg7[%c0_7, %c0_8], %4 {strides = array<i32>} : memref<256x512xf32, #tpu.memory_space<vmem>>, vector<8x512xf32>,
    %c0_9 = arith.constant 0 : index
    %c18 = arith.constant 18 : index
    %6 = vector.load %arg6[%c0_9, %c18] : memref<8x1024xf32, #tpu.memory_space<vmem>>, vector<8x512xf32>
    %c8 = arith.constant 8 : index
    %c0_10 = arith.constant 0 : index
    %7 = vector.load %arg7[%c8, %c0_10] : memref<256x512xf32, #tpu.memory_space<vmem>>, vector<8x512xf32>
    tpu.vector_store %arg7[%c8, %c0_10], %6 {strides = array<i32>} : memref<256x512xf32, #tpu.memory_space<vmem>>, vector<8x512xf32>,
    %c0_11 = arith.constant 0 : index
    %c19 = arith.constant 19 : index
    %8 = vector.load %arg6[%c0_11, %c19] : memref<8x1024xf32, #tpu.memory_space<vmem>>, vector<8x512xf32>
    %c16 = arith.constant 16 : index
    %c0_12 = arith.constant 0 : index
    %9 = vector.load %arg7[%c16, %c0_12] : memref<256x512xf32, #tpu.memory_space<vmem>>, vector<8x512xf32>
    tpu.vector_store %arg7[%c16, %c0_12], %8 {strides = array<i32>} : memref<256x512xf32, #tpu.memory_space<vmem>>, vector<8x512xf32>,
    %c0_13 = arith.constant 0 : index
    %c27 = arith.constant 27 : index
    %10 = vector.load %arg6[%c0_13, %c27] : memref<8x1024xf32, #tpu.memory_space<vmem>>, vector<8x512xf32>
    %c24 = arith.constant 24 : index
    %c0_14 = arith.constant 0 : index
    %11 = vector.load %arg7[%c24, %c0_14] : memref<256x512xf32, #tpu.memory_space<vmem>>, vector<8x512xf32>
    tpu.vector_store %arg7[%c24, %c0_14], %10 {strides = array<i32>} : memref<256x512xf32, #tpu.memory_space<vmem>>, vector<8x512xf32>,
    %c0_15 = arith.constant 0 : index
    %c28 = arith.constant 28 : index
    %12 = vector.load %arg6[%c0_15, %c28] : memref<8x1024xf32, #tpu.memory_space<vmem>>, vector<8x512xf32>
    %c32 = arith.constant 32 : index
    %c0_16 = arith.constant 0 : index
    %13 = vector.load %arg7[%c32, %c0_16] : memref<256x512xf32, #tpu.memory_space<vmem>>, vector<8x512xf32>
    tpu.vector_store %arg7[%c32, %c0_16], %12 {strides = array<i32>} : memref<256x512xf32, #tpu.memory_space<vmem>>, vector<8x512xf32>,
    %c0_17 = arith.constant 0 : index
    %c29 = arith.constant 29 : index
    %14 = vector.load %arg6[%c0_17, %c29] : memref<8x1024xf32, #tpu.memory_space<vmem>>, vector<8x512xf32>
    %c40 = arith.constant 40 : index
    %c0_18 = arith.constant 0 : index
    %15 = vector.load %arg7[%c40, %c0_18] : memref<256x512xf32, #tpu.memory_space<vmem>>, vector<8x512xf32>
    tpu.vector_store %arg7[%c40, %c0_18], %14 {strides = array<i32>} : memref<256x512xf32, #tpu.memory_space<vmem>>, vector<8x512xf32>,
    %c0_19 = arith.constant 0 : index
    %c37 = arith.constant 37 : index
    %16 = vector.load %arg6[%c0_19, %c37] : memref<8x1024xf32, #tpu.memory_space<vmem>>, vector<8x512xf32>
    %c48 = arith.constant 48 : index
    %c0_20 = arith.constant 0 : index
    %17 = vector.load %arg7[%c48, %c0_20] : memref<256x512xf32, #tpu.memory_space<vmem>>, vector<8x512xf32>
    tpu.vector_store %arg7[%c48, %c0_20], %16 {strides = array<i32>} : memref<256x512xf32, #tpu.memory_space<vmem>>, vector<8x512xf32>,
    %c0_21 = arith.constant 0 : index
    %c38 = arith.constant 38 : index
    %18 = vector.load %arg6[%c0_21, %c38] : memref<8x1024xf32, #tpu.memory_space<vmem>>, vector<8x512xf32>
    %c56 = arith.constant 56 : index
    %c0_22 = arith.constant 0 : index
    %19 = vector.load %arg7[%c56, %c0_22] : memref<256x512xf32, #tpu.memory_space<vmem>>, vector<8x512xf32>
    tpu.vector_store %arg7[%c56, %c0_22], %18 {strides = array<i32>} : memref<256x512xf32, #tpu.memory_space<vmem>>, vector<8x512xf32>,
    %c0_23 = arith.constant 0 : index
    %c39 = arith.constant 39 : index
    %20 = vector.load %arg6[%c0_23, %c39] : memref<8x1024xf32, #tpu.memory_space<vmem>>, vector<8x512xf32>
    %c64 = arith.constant 64 : index
    %c0_24 = arith.constant 0 : index
    %21 = vector.load %arg7[%c64, %c0_24] : memref<256x512xf32, #tpu.memory_space<vmem>>, vector<8x512xf32>
    tpu.vector_store %arg7[%c64, %c0_24], %20 {strides = array<i32>} : memref<256x512xf32, #tpu.memory_space<vmem>>, vector<8x512xf32>,
    %c0_25 = arith.constant 0 : index
    %c117 = arith.constant 117 : index
    %22 = vector.load %arg6[%c0_25, %c117] : memref<8x1024xf32, #tpu.memory_space<vmem>>, vector<8x512xf32>
    %c72 = arith.constant 72 : index
    %c0_26 = arith.constant 0 : index
    %23 = vector.load %arg7[%c72, %c0_26] : memref<256x512xf32, #tpu.memory_space<vmem>>, vector<8x512xf32>
    tpu.vector_store %arg7[%c72, %c0_26], %22 {strides = array<i32>} : memref<256x512xf32, #tpu.memory_space<vmem>>, vector<8x512xf32>,
    %c0_27 = arith.constant 0 : index
    %c118 = arith.constant 118 : index
    %24 = vector.load %arg6[%c0_27, %c118] : memref<8x1024xf32, #tpu.memory_space<vmem>>, vector<8x512xf32>
    %c80 = arith.constant 80 : index
    %c0_28 = arith.constant 0 : index
    %25 = vector.load %arg7[%c80, %c0_28] : memref<256x512xf32, #tpu.memory_space<vmem>>, vector<8x512xf32>
    tpu.vector_store %arg7[%c80, %c0_28], %24 {strides = array<i32>} : memref<256x512xf32, #tpu.memory_space<vmem>>, vector<8x512xf32>,
    %c0_29 = arith.constant 0 : index
    %c119 = arith.constant 119 : index
    %26 = vector.load %arg6[%c0_29, %c119] : memref<8x1024xf32, #tpu.memory_space<vmem>>, vector<8x512xf32>
    %c88 = arith.constant 88 : index
    %c0_30 = arith.constant 0 : index
    %27 = vector.load %arg7[%c88, %c0_30] : memref<256x512xf32, #tpu.memory_space<vmem>>, vector<8x512xf32>
    tpu.vector_store %arg7[%c88, %c0_30], %26 {strides = array<i32>} : memref<256x512xf32, #tpu.memory_space<vmem>>, vector<8x512xf32>,
    %c0_31 = arith.constant 0 : index
    %c127 = arith.constant 127 : index
    %28 = vector.load %arg6[%c0_31, %c127] : memref<8x1024xf32, #tpu.memory_space<vmem>>, vector<8x512xf32>
    %c96 = arith.constant 96 : index
    %c0_32 = arith.constant 0 : index
    %29 = vector.load %arg7[%c96, %c0_32] : memref<256x512xf32, #tpu.memory_space<vmem>>, vector<8x512xf32>
    tpu.vector_store %arg7[%c96, %c0_32], %28 {strides = array<i32>} : memref<256x512xf32, #tpu.memory_space<vmem>>, vector<8x512xf32>,
    %c0_33 = arith.constant 0 : index
    %c128 = arith.constant 128 : index
    %30 = vector.load %arg6[%c0_33, %c128] : memref<8x1024xf32, #tpu.memory_space<vmem>>, vector<8x512xf32>
    %c104 = arith.constant 104 : index
    %c0_34 = arith.constant 0 : index
    %31 = vector.load %arg7[%c104, %c0_34] : memref<256x512xf32, #tpu.memory_space<vmem>>, vector<8x512xf32>
    tpu.vector_store %arg7[%c104, %c0_34], %30 {strides = array<i32>} : memref<256x512xf32, #tpu.memory_space<vmem>>, vector<8x512xf32>,
    %c0_35 = arith.constant 0 : index
    %c129 = arith.constant 129 : index
    %32 = vector.load %arg6[%c0_35, %c129] : memref<8x1024xf32, #tpu.memory_space<vmem>>, vector<8x512xf32>
    %c112 = arith.constant 112 : index
    %c0_36 = arith.constant 0 : index
    %33 = vector.load %arg7[%c112, %c0_36] : memref<256x512xf32, #tpu.memory_space<vmem>>, vector<8x512xf32>
    tpu.vector_store %arg7[%c112, %c0_36], %32 {strides = array<i32>} : memref<256x512xf32, #tpu.memory_space<vmem>>, vector<8x512xf32>,
    %c0_37 = arith.constant 0 : index
    %c137 = arith.constant 137 : index
    %34 = vector.load %arg6[%c0_37, %c137] : memref<8x1024xf32, #tpu.memory_space<vmem>>, vector<8x512xf32>
    %c120 = arith.constant 120 : index
    %c0_38 = arith.constant 0 : index
    %35 = vector.load %arg7[%c120, %c0_38] : memref<256x512xf32, #tpu.memory_space<vmem>>, vector<8x512xf32>
    tpu.vector_store %arg7[%c120, %c0_38], %34 {strides = array<i32>} : memref<256x512xf32, #tpu.memory_space<vmem>>, vector<8x512xf32>,
    %c0_39 = arith.constant 0 : index
    %c138 = arith.constant 138 : index
    %36 = vector.load %arg6[%c0_39, %c138] : memref<8x1024xf32, #tpu.memory_space<vmem>>, vector<8x512xf32>
    %c128_40 = arith.constant 128 : index
    %c0_41 = arith.constant 0 : index
    %37 = vector.load %arg7[%c128_40, %c0_41] : memref<256x512xf32, #tpu.memory_space<vmem>>, vector<8x512xf32>
    tpu.vector_store %arg7[%c128_40, %c0_41], %36 {strides = array<i32>} : memref<256x512xf32, #tpu.memory_space<vmem>>, vector<8x512xf32>,
    %c0_42 = arith.constant 0 : index
    %c139 = arith.constant 139 : index
    %38 = vector.load %arg6[%c0_42, %c139] : memref<8x1024xf32, #tpu.memory_space<vmem>>, vector<8x512xf32>
    %c136 = arith.constant 136 : index
    %c0_43 = arith.constant 0 : index
    %39 = vector.load %arg7[%c136, %c0_43] : memref<256x512xf32, #tpu.memory_space<vmem>>, vector<8x512xf32>
    tpu.vector_store %arg7[%c136, %c0_43], %38 {strides = array<i32>} : memref<256x512xf32, #tpu.memory_space<vmem>>, vector<8x512xf32>,
    %c0_44 = arith.constant 0 : index
    %c217 = arith.constant 217 : index
    %40 = vector.load %arg6[%c0_44, %c217] : memref<8x1024xf32, #tpu.memory_space<vmem>>, vector<8x512xf32>
    %c144 = arith.constant 144 : index
    %c0_45 = arith.constant 0 : index
    %41 = vector.load %arg7[%c144, %c0_45] : memref<256x512xf32, #tpu.memory_space<vmem>>, vector<8x512xf32>
    tpu.vector_store %arg7[%c144, %c0_45], %40 {strides = array<i32>} : memref<256x512xf32, #tpu.memory_space<vmem>>, vector<8x512xf32>,
    %c0_46 = arith.constant 0 : index
    %c218 = arith.constant 218 : index
    %42 = vector.load %arg6[%c0_46, %c218] : memref<8x1024xf32, #tpu.memory_space<vmem>>, vector<8x512xf32>
    %c152 = arith.constant 152 : index
    %c0_47 = arith.constant 0 : index
    %43 = vector.load %arg7[%c152, %c0_47] : memref<256x512xf32, #tpu.memory_space<vmem>>, vector<8x512xf32>
    tpu.vector_store %arg7[%c152, %c0_47], %42 {strides = array<i32>} : memref<256x512xf32, #tpu.memory_space<vmem>>, vector<8x512xf32>,
    %c0_48 = arith.constant 0 : index
    %c219 = arith.constant 219 : index
    %44 = vector.load %arg6[%c0_48, %c219] : memref<8x1024xf32, #tpu.memory_space<vmem>>, vector<8x512xf32>
    %c160 = arith.constant 160 : index
    %c0_49 = arith.constant 0 : index
    %45 = vector.load %arg7[%c160, %c0_49] : memref<256x512xf32, #tpu.memory_space<vmem>>, vector<8x512xf32>
    tpu.vector_store %arg7[%c160, %c0_49], %44 {strides = array<i32>} : memref<256x512xf32, #tpu.memory_space<vmem>>, vector<8x512xf32>,
    %c0_50 = arith.constant 0 : index
    %c227 = arith.constant 227 : index
    %46 = vector.load %arg6[%c0_50, %c227] : memref<8x1024xf32, #tpu.memory_space<vmem>>, vector<8x512xf32>
    %c168 = arith.constant 168 : index
    %c0_51 = arith.constant 0 : index
    %47 = vector.load %arg7[%c168, %c0_51] : memref<256x512xf32, #tpu.memory_space<vmem>>, vector<8x512xf32>
    tpu.vector_store %arg7[%c168, %c0_51], %46 {strides = array<i32>} : memref<256x512xf32, #tpu.memory_space<vmem>>, vector<8x512xf32>,
    %c0_52 = arith.constant 0 : index
    %c228 = arith.constant 228 : index
    %48 = vector.load %arg6[%c0_52, %c228] : memref<8x1024xf32, #tpu.memory_space<vmem>>, vector<8x512xf32>
    %c176 = arith.constant 176 : index
    %c0_53 = arith.constant 0 : index
    %49 = vector.load %arg7[%c176, %c0_53] : memref<256x512xf32, #tpu.memory_space<vmem>>, vector<8x512xf32>
    tpu.vector_store %arg7[%c176, %c0_53], %48 {strides = array<i32>} : memref<256x512xf32, #tpu.memory_space<vmem>>, vector<8x512xf32>,
    %c0_54 = arith.constant 0 : index
    %c229 = arith.constant 229 : index
    %50 = vector.load %arg6[%c0_54, %c229] : memref<8x1024xf32, #tpu.memory_space<vmem>>, vector<8x512xf32>
    %c184 = arith.constant 184 : index
    %c0_55 = arith.constant 0 : index
    %51 = vector.load %arg7[%c184, %c0_55] : memref<256x512xf32, #tpu.memory_space<vmem>>, vector<8x512xf32>
    tpu.vector_store %arg7[%c184, %c0_55], %50 {strides = array<i32>} : memref<256x512xf32, #tpu.memory_space<vmem>>, vector<8x512xf32>,
    %c0_56 = arith.constant 0 : index
    %c237 = arith.constant 237 : index
    %52 = vector.load %arg6[%c0_56, %c237] : memref<8x1024xf32, #tpu.memory_space<vmem>>, vector<8x512xf32>
    %c192 = arith.constant 192 : index
    %c0_57 = arith.constant 0 : index
    %53 = vector.load %arg7[%c192, %c0_57] : memref<256x512xf32, #tpu.memory_space<vmem>>, vector<8x512xf32>
    tpu.vector_store %arg7[%c192, %c0_57], %52 {strides = array<i32>} : memref<256x512xf32, #tpu.memory_space<vmem>>, vector<8x512xf32>,
    %c0_58 = arith.constant 0 : index
    %c238 = arith.constant 238 : index
    %54 = vector.load %arg6[%c0_58, %c238] : memref<8x1024xf32, #tpu.memory_space<vmem>>, vector<8x512xf32>
    %c200 = arith.constant 200 : index
    %c0_59 = arith.constant 0 : index
    %55 = vector.load %arg7[%c200, %c0_59] : memref<256x512xf32, #tpu.memory_space<vmem>>, vector<8x512xf32>
    tpu.vector_store %arg7[%c200, %c0_59], %54 {strides = array<i32>} : memref<256x512xf32, #tpu.memory_space<vmem>>, vector<8x512xf32>,
    %c0_60 = arith.constant 0 : index
    %c239 = arith.constant 239 : index
    %56 = vector.load %arg6[%c0_60, %c239] : memref<8x1024xf32, #tpu.memory_space<vmem>>, vector<8x512xf32>
    %c208 = arith.constant 208 : index
    %c0_61 = arith.constant 0 : index
    %57 = vector.load %arg7[%c208, %c0_61] : memref<256x512xf32, #tpu.memory_space<vmem>>, vector<8x512xf32>
    tpu.vector_store %arg7[%c208, %c0_61], %56 {strides = array<i32>} : memref<256x512xf32, #tpu.memory_space<vmem>>, vector<8x512xf32>,
    %cst = arith.constant 0.000000e+00 : f32
    %58 = vector.broadcast %cst : f32 to vector<40x512xf32>
    %c216 = arith.constant 216 : index
    %c0_62 = arith.constant 0 : index
    %59 = vector.load %arg7[%c216, %c0_62] : memref<256x512xf32, #tpu.memory_space<vmem>>, vector<40x512xf32>
    tpu.vector_store %arg7[%c216, %c0_62], %58 {strides = array<i32>} : memref<256x512xf32, #tpu.memory_space<vmem>>, vector<40x512xf32>,
    %c0_63 = arith.constant 0 : index
    %c0_64 = arith.constant 0 : index
    %60 = vector.load %arg1[%c0_63, %c0_64] : memref<8x256xf32, #tpu.memory_space<vmem>>, vector<8x256xf32>
    %c0_65 = arith.constant 0 : index
    %c0_66 = arith.constant 0 : index
    %61 = vector.load %arg7[%c0_65, %c0_66] : memref<256x512xf32, #tpu.memory_space<vmem>>, vector<256x512xf32>
    %cst_67 = arith.constant dense<0.000000e+00> : vector<8x512xf32>
    %62 = tpu.matmul %60, %61, %cst_67 {dimension_numbers = #tpu.dot_dimension_numbers<[1], [0], [0], [1], [0, 0, 1, 1], [], []>} : vector<8x256xf32>, vector<256x512xf32>, vector<8x512xf32> -> vector<8x512xf32>
    %c0_68 = arith.constant 0 : index
    %c0_69 = arith.constant 0 : index
    %63 = vector.load %arg2[%c0_68, %c0_69] : memref<8x1xf32, #tpu.memory_space<vmem>>, vector<8x1xf32>
    %64 = vector.broadcast %63 : vector<8x1xf32> to vector<8x512xf32>
    %65 = arith.addf %62, %64 : vector<8x512xf32>
    %cst_70 = arith.constant 0.000000e+00 : f32
    %66 = vector.broadcast %cst_70 : f32 to vector<8x512xf32>
    %67 = arith.cmpf oge, %65, %66 : vector<8x512xf32>
    %cst_71 = arith.constant 1.000000e-01 : f32
    %68 = vector.broadcast %cst_71 : f32 to vector<8x512xf32>
    %69 = arith.mulf %68, %65 : vector<8x512xf32>
    %70 = arith.select %67, %65, %69 : vector<8x512xi1>, vector<8x512xf32>
    %c0_72 = arith.constant 0 : index
    %c0_73 = arith.constant 0 : index
    %71 = vector.load %arg5[%c0_72, %c0_73] : memref<8x512xf32, #tpu.memory_space<vmem>>, vector<8x512xf32>
    tpu.vector_store %arg5[%c0_72, %c0_73], %70 {strides = array<i32>} : memref<8x512xf32, #tpu.memory_space<vmem>>, vector<8x512xf32>,
    return
  }
  func.func @transform_0(%arg0: i32) -> (i32, i32) {
    %c0_i32 = arith.constant 0 : i32
    %c0_i32_0 = arith.constant 0 : i32
    %c0_i32_1 = arith.constant 0 : i32
    return %c0_i32, %c0_i32_0 : i32, i32
  }
  func.func @transform_1(%arg0: i32) -> (i32, i32) {
    %c0_i32 = arith.constant 0 : i32
    %c0_i32_0 = arith.constant 0 : i32
    %c0_i32_1 = arith.constant 0 : i32
    return %c0_i32, %c0_i32_0 : i32, i32
  }
  func.func @transform_2(%arg0: i32) -> (i32, i32) {
    %c0_i32 = arith.constant 0 : i32
    %c0_i32_0 = arith.constant 0 : i32
    return %c0_i32, %arg0 : i32, i32
  }
  func.func @transform_3(%arg0: i32) -> (i32, i32) {
    %c1_i32 = arith.constant 1 : i32
    %0 = arith.addi %arg0, %c1_i32 : i32
    %c0_i32 = arith.constant 0 : i32
    %c0_i32_0 = arith.constant 0 : i32
    return %c0_i32, %0 : i32, i32
  }
  func.func @transform_4(%arg0: i32) -> (i32, i32) {
    %c0_i32 = arith.constant 0 : i32
    %c0_i32_0 = arith.constant 0 : i32
    return %c0_i32, %arg0 : i32, i32
  }
}

</mosaic_0001>

<bundles_post_ra>
// kernel: tpu_custom_call.1
= control target key start
LH: loop header
LB: loop body
LE: loop exit
PB: predicated region body
PF: predicated region fallthrough
CT: control target
= control target key end

     0   :  { %s3124_s0 = inlined_call_operand.hbm [shape: f32[8,256], index: 0, kind: input, shape index: {}]   ;;  %s3125_s1 = inlined_call_operand.vmem [shape: f32[8,1], index: 1, kind: input, shape index: {}]   ;;  %s3126_s2 = inlined_call_operand.hbm [shape: f32[8,2560], index: 2, kind: input, shape index: {}]   ;;  %s3127_s3 = inlined_call_operand.hbm [shape: f32[8,2560], index: 3, kind: input, shape index: {}]   ;;  %s3128_s4 = inlined_call_operand.hbm [shape: f32[8,2048], index: 4, kind: output, shape index: {}]  }
   0x1   :  { %3146 = sst [smem:[#allocation27_spill]] %s3124_s0 }
   0x2   :  { %3147 = sst [smem:[#allocation28_spill]] %s3126_s2 }
   0x3   :  { %9 = vsyncpa [#allocation5], 0 }
   0x4   :  { %10 = vsyncpa [#allocation8], 0 }
   0x5   :  { %12 = vsyncpa [#allocation8 + $0x1], 0 }
   0x6   :  { %13 = vsyncpa [#allocation6], 0 }
   0x7   :  { %15 = vsyncpa [#allocation6 + $0x1], 0  ;;  %s2248_s15 = smov 0   ;;  %s2250_s16 = smov 0  }
   0x8   :  { %s2252_s17 = smov 0   ;;  %s2254_s18 = smov 0  }
   0x9   :  { %s2256_s19 = smov 0   ;;  %s2258_s20 = smov 0  }
   0xa   :  { %s2260_s21 = smov 0  }
   0xb LB: > { %s1609_s22 = sadd.s32 4294967294, %s2193_s21   ;;  %s2285_s23 = sadd.s32 1, %s2193_s21   ;;  %s2193_s21 = sphi %s2260_s21, %s3210_s21   ;;  %s2189_s20 = sphi %s2258_s20, %s3209_s20   ;;  %s2185_s19 = sphi %s2256_s19, %s3208_s19   ;;  %s2181_s18 = sphi %s2254_s18, %s3207_s18   ;;  %s2177_s17 = sphi %s2252_s17, %s3206_s17   ;;  %s2173_s16 = sphi %s2250_s16, %s3205_s16   ;;  %s2169_s15 = sphi %s2248_s15, %s3204_s15  }
   0xc   : > { %s67_s24 = ssub.s32 %s2193_s21, %s2285_s23  ;;  %s70_s25 = sadd.s32 1, %s2189_s20 }
   0xd   : > { %p68_p0 = scmp.eq.s32.totalorder %s67_s24, 0  ;;  %p77_p1 = scmp.ne.s32.totalorder %s2189_s20, %s2185_s19 }
   0xe   : > { %p78_p2 = scmp.eq.s32.totalorder %s2193_s21, 0  ;;  %p83_p3 = scmp.ne.s32.totalorder %s2185_s19, %s2181_s18 }
   0xf   : > { %s2296_s26 = scalar_select %p68_p0, %s2189_s20, %s70_s25  }
  0x10   : > { %p2303_p4 = por %p78_p2, %p77_p1  ;;  %p141_p5 = scmp.eq.s32.totalorder %s1609_s22, 3 }
  0x11   : > { %3148 = sst [smem:[#allocation15_spill]] %s2296_s26  ;;  %p1656_p6 = scmp.lt.s32.totalorder %s2193_s21, 4 }
  0x12   : > { %p2311_p7 = por %p141_p5, %p83_p3  ;;  %s176_s29 = sand.u32 1, %s2193_s21  }
  0x13   : > { %s178_s30 = sand.u32 1, %s2189_s20   ;;  %s1628_s6 = sshll.u32 %s2193_s21, 5 }
  0x14   : > { %s1613_s5 = sshll.u32 %s178_s30, 5  ;;  %s3151_s2 = sld [smem:[#allocation28_spill]] }
  0x15   : > { %s180_s11 = scalar_lea.vmem [#allocation7], %s1613_s5  ;;  %p2325_p8 = pnand %p1656_p6, %p2303_p4 }
  0x16   : > { %s189_s12 = sshll.u32 %s180_s11, 4  ;;  %s2332_s24 = scalar_lea.hbm %s3127_s3, %s1628_s6  ;;  %s190_s12 = int_to_ptr.vmem [resolvable:$true] %s189_s12 }
  0x17   : > { %s2334_s25 = scalar_lea.sflag [#allocation8], %s176_s29  ;;  %p2009_p10 = pneg %p2325_p8 }
  0x1a   : > { %s185_s9 = scalar_lea.hbm %s3151_s2, %s1628_s6  ;;  %s2012_s8 = scalar_lea.hbm %s3151_s2, 160 }
  0x1b   : > { %s187_s10 = sshll.u32 %s185_s9, 4  ;;  %s188_s10 = int_to_ptr.hbm [resolvable:$true] %s187_s10 }
  0x1c   : > { %s2005_s30 = sshra.s32 %s188_s10, 4  ;;  %s2006_s30 = int_to_ptr.hbm [resolvable:$true] %s2005_s30 }
  0x1d   : > { %s2007_s5 = scalar_lea.hbm %s2006_s30, 32  ;;  %p2013_p13 = scmp.lt.s32.totalorder %s2006_s30, %s3151_s2 }
  0x1e   : > { %p2008_p9 = scmp.ne.s32.totalorder %s2006_s30, %s2007_s5  ;;  %p2014_p0 = scmp.lt.s32.totalorder %s2012_s8, %s2007_s5 }
  0x20   : > { %p2010_p11 = pnand %p2009_p10, %p2008_p9  ;;  %p2015_p4 = por %p2014_p0, %p2013_p13 }
  0x22   : > { %p2011_p12 = pneg %p2010_p11 }
  0x24   : > { %p2016_p5 = pnand %p2015_p4, %p2011_p12 }
  0x26   : > { %2019 = shalt.err (!%p2016_p5)
}
  0x27   : > { %1647 = dma.hbm_to_vmem [thread:$0]  (!%p2325_p8), %s188_s10, 512, %s190_s12, %s2334_s25  }
  0x28   : > { %s2348_s29 = sadd.s32 4294967295, %s2193_s21   ;;  %p111_p10 = scmp.ne.s32.totalorder %s2173_s16, %s2169_s15 }
  0x29   : > { %p3129_p9 = scmp.eq.s32.totalorder %s2348_s29, 0  ;;  %p135_p11 = scmp.eq.s32.totalorder %s2348_s29, 3 }
  0x2a   : > { %p1610_p12 = scmp.ge.s32.totalorder %s2193_s21, 1  ;;  %p148_p4 = scmp.lt.s32.totalorder %s2193_s21, 5 }
  0x2b   : > { %p2360_p13 = por %p3129_p9, %p83_p3  ;;  %p2366_p8 = por %p111_p10, %p3129_p9 }
  0x2c   : > { %p2373_p0 = por %p135_p11, %p77_p1  ;;  %s3156_s0 = sld [smem:[#allocation27_spill]] }
  0x2d   : > { %p2381_p3 = pnand %p1610_p12, %p148_p4  ;;  %s2195_s30 = smov [#allocation4]  }
  0x2e   : > { %s162_s5 = sshll.u32 %s2195_s30, 4  ;;  %s94_s27 = sadd.s32 1, %s2285_s23  ;;  %s163_s5 = int_to_ptr.vmem [resolvable:$true] %s162_s5 }
  0x2f   : > { %p1640_p1 = pneg %p2381_p3  ;;  %s95_s7 = ssub.s32 %s2285_s23, %s94_s27 }
  0x30   : > { %s98_s8 = sadd.s32 1, %s2177_s17  ;;  %p96_p10 = scmp.eq.s32.totalorder %s95_s7, 0 }
  0x31   : > { %p1641_p5 = pnand %p1640_p1, %p3129_p9  ;;  %p105_p11 = scmp.ne.s32.totalorder %s2177_s17, %s2173_s16 }
  0x32   : > { %s160_s14 = sshll.u32 %s3156_s0, 4  ;;  %s198_s11 = sand.u32 1, %s2177_s17   ;;  %s161_s14 = int_to_ptr.hbm [resolvable:$true] %s160_s14 }
  0x33   : > { %1643 = dma.hbm_to_vmem [thread:$0]  (!%p1641_p5), %s161_s14, 256, %s163_s5, [#allocation5]  }
  0x34   : > { %s2393_s9 = scalar_select %p96_p10, %s2177_s17, %s98_s8  }
  0x35   : > { %s1616_s15 = sshll.u32 %s198_s11, 5  ;;  %s1543_s13 = scalar_lea.hbm %s2332_s24, 32 }
  0x36   : > { %p107_p12 = por %p105_p11, %p78_p2  ;;  %s208_s0 = sshll.u32 %s1543_s13, 4  ;;  %s209_s0 = int_to_ptr.hbm [resolvable:$true] %s208_s0 }
  0x37   : > { %s200_s2 = scalar_lea.vmem [#allocation9], %s1616_s15  ;;  %s2065_s14 = sshra.s32 %s209_s0, 4  ;;  %s2066_s14 = int_to_ptr.hbm [resolvable:$true] %s2065_s14 }
  0x38   : > { %s210_s30 = sshll.u32 %s200_s2, 4  ;;  %p2403_p4 = pnand %p1656_p6, %p107_p12  ;;  %s211_s30 = int_to_ptr.vmem [resolvable:$true] %s210_s30 }
  0x39   : > { %s2067_s5 = scalar_lea.hbm %s2066_s14, 32  ;;  %s2072_s2 = scalar_lea.hbm %s3127_s3, 160 }
  0x3a   : > { %p2068_p1 = scmp.ne.s32.totalorder %s2066_s14, %s2067_s5  ;;  %p2069_p5 = pneg %p2403_p4 }
  0x3b   : > { %p2073_p2 = scmp.lt.s32.totalorder %s2066_s14, %s3127_s3  ;;  %p2074_p6 = scmp.lt.s32.totalorder %s2072_s2, %s2067_s5 }
  0x3c   : > { %p2070_p10 = pnand %p2069_p5, %p2068_p1 }
  0x3d   : > { %p2075_p11 = por %p2074_p6, %p2073_p2 }
  0x3e   : > { %p2071_p9 = pneg %p2070_p10 }
  0x40   : > { %p2076_p12 = pnand %p2075_p11, %p2071_p9 }
  0x42   : > { %2079 = shalt.err (!%p2076_p12)
}
  0x43   : > { %1650 = dma.hbm_to_vmem [thread:$0]  (!%p2403_p4), %s209_s0, 512, %s211_s30, %s2334_s25  }
  0x44   : > { %219 = sbr.rel (%p2381_p3) target bundleno = 569 (0x239), region = 36 }
  0x49   : > { %p3159_p1 = scmp.eq.s32.totalorder %s2348_s29, 0 }
  0x4b   : > { %2152 = dma.done.wait (%p3159_p1), [#allocation5], 256   ;;  %p3160_p5 = pmov %p3159_p1 }
  0x4c   : > { %s226_s11 = sand.u32 1, %s2348_s29   ;;  %s228_s15 = sand.u32 1, %s2185_s19  }
  0x4d   : > { %2154 = vsyncadd (%p3160_p5), [#allocation5], 4294967040  ;;  %s2428_s13 = sshll.u32 %s228_s15, 5  ;;  %s227_s0 = scalar_lea.sflag [#allocation8], %s226_s11 }
  0x4e   : > { %s2431_s26 = scalar_lea.vmem [#allocation7], %s2428_s13 }
  0x4f   : > { %2156 = dma.done.wait (%p2360_p13), %s227_s0, 512  }
  0x50   : > { %2158 = vsyncadd (%p2360_p13), %s227_s0, 4294966784  ;;  %s238_s25 = sand.u32 1, %s2173_s16  }
  0x51   : > { %s2438_s22 = sshll.u32 %s238_s25, 5 }
  0x52   : > { %s240_s30 = scalar_lea.vmem [#allocation9], %s2438_s22 }
  0x53   : > { %2160 = dma.done.wait (%p2366_p8), %s227_s0, 512  }
  0x54   : > { %2162 = vsyncadd (%p2366_p8), %s227_s0, 4294966784  ;;  %v2447_v0 = vld [vmem:[%s240_s30] sm:$0xff]  ;;  %v2453_v2 = vld [vmem:[%s2431_s26 + $0x8] sm:$0xff]  ;;  %s2196_s6 = smov 111   ;;  %s2197_s10 = smov 110   ;;  %vm344_vm0 = vcmask 900096  }
  0x55   : > { %v2450_v1 = vld [vmem:[%s2431_s26] sm:$0xff]  ;;  %309 = vrot.lane.b32.xlu1 %v2447_v0, %s2196_s6  ;;  %v2459_v4 = vld [vmem:[%s2431_s26 + $0x10] sm:$0xff]  ;;  %v2462_v5 = vld [vmem:[%s2431_s26 + $0x18] sm:$0xff]  ;;  %s2198_s14 = smov 109   ;;  %s2199_s5 = smov 101   ;;  %v2493_v10 = vpack.i.bf16 %v2447_v0, %v2453_v2  ;;  %vm311_vm1 = vcmask 908288  }
  0x56   : > { %v1743_v3 = vpack.i.bf16 %v2453_v2, %v2450_v1  ;;  %v2466_v6 = vpack.i.bf16 %v2462_v5, %v2459_v4  ;;  %s2200_s24 = smov 100   ;;  %s2201_s27 = smov 99   ;;  %v1878_v13 = vpack.i.bf16 %v2459_v4, %v2453_v2  ;;  %v1888_v15 = vpack.i.bf16 %v2462_v5, %v2450_v1  ;;  %v2513_v17 = vld [vmem:[%s240_s30 + $0x8] sm:$0xff] }
  0x57   : > { %s2202_s2 = smov 91   ;;  %s2203_s7 = smov 90   ;;  %vm377_vm2 = vcmask 891904   ;;  %vm410_vm3 = vcmask 826368   ;;  %vm443_vm4 = vcmask 818176   ;;  %vm476_vm5 = vcmask 809984  }
  0x58   : > { %1744 = vrot.lane.b32.xlu0 %v1743_v3, %s2196_s6  ;;  %1759 = vrot.lane.b32.xlu2 %v2466_v6, %s2197_s10  ;;  %s2204_s8 = smov 89   ;;  %s2205_s11 = smov 11   ;;  %vm509_vm6 = vcmask 744448   ;;  %vm542_vm7 = vcmask 736256   ;;  %vm575_vm8 = vcmask 728064   ;;  %vm608_vm9 = vcmask 89088  }
  0x59   : > { %s2206_s0 = smov 10   ;;  %s2207_s25 = smov 9   ;;  %vm641_vm10 = vcmask 80896   ;;  %vm3145_vm11 = vcmask 72704   ;;  %vm781_vm12 = vcmask 973824   ;;  %vm748_vm13 = vcmask 1039360  }
  0x5a   : > { %s2214_s22 = smov 27   ;;  %s2215_s30 = smov 28   ;;  %vm707_vm14 = vcmask 7168   ;;  %vm1144_vm15 = vcmask 138240  }
  0x5d   : > { %1754 = vrot.lane.b32.xlu1 %v1743_v3, %s2197_s10 }
  0x60   : > { %1749 = vrot.lane.b32.xlu0 %v2466_v6, %s2196_s6  ;;  %342 = vrot.lane.b32.xlu2 %v2447_v0, %s2197_s10  ;;  %s2208_s6 = smov 127   ;;  %s2209_s10 = smov 119  }
  0x65   : > { %1769 = vrot.lane.b32.xlu1 %v2466_v6, %s2198_s14 }
  0x68   : > { %1764 = vrot.lane.b32.xlu0 %v1743_v3, %s2198_s14  ;;  %375 = vrot.lane.b32.xlu2 %v2447_v0, %s2198_s14  ;;  %s2210_s14 = smov 1  }
  0x6d   : > { %1779 = vrot.lane.b32.xlu1 %v2466_v6, %s2199_s5 }
  0x70   : > { %1774 = vrot.lane.b32.xlu0 %v1743_v3, %s2199_s5  ;;  %408 = vrot.lane.b32.xlu2 %v2447_v0, %s2199_s5  ;;  %s2211_s5 = smov 17  }
  0x75   : > { %1789 = vrot.lane.b32.xlu1 %v2466_v6, %s2200_s24 }
  0x78   : > { %1784 = vrot.lane.b32.xlu0 %v1743_v3, %s2200_s24  ;;  %441 = vrot.lane.b32.xlu2 %v2447_v0, %s2200_s24  ;;  %s2212_s24 = smov 18  }
  0x7d   : > { %1799 = vrot.lane.b32.xlu1 %v2466_v6, %s2201_s27 }
  0x80   : > { %1794 = vrot.lane.b32.xlu0 %v1743_v3, %s2201_s27  ;;  %474 = vrot.lane.b32.xlu2 %v2447_v0, %s2201_s27  ;;  %s2213_s27 = smov 19  }
  0x85   : > { %1809 = vrot.lane.b32.xlu1 %v2466_v6, %s2202_s2 }
  0x88   : > { %1804 = vrot.lane.b32.xlu0 %v1743_v3, %s2202_s2  ;;  %507 = vrot.lane.b32.xlu2 %v2447_v0, %s2202_s2  ;;  %s2216_s2 = smov 29  }
  0x8d   : > { %1819 = vrot.lane.b32.xlu1 %v2466_v6, %s2203_s7 }
  0x90   : > { %1814 = vrot.lane.b32.xlu0 %v1743_v3, %s2203_s7  ;;  %540 = vrot.lane.b32.xlu2 %v2447_v0, %s2203_s7  ;;  %s2217_s7 = smov 37  }
  0x95   : > { %1829 = vrot.lane.b32.xlu1 %v2466_v6, %s2204_s8 }
  0x98   : > { %1824 = vrot.lane.b32.xlu0 %v1743_v3, %s2204_s8  ;;  %573 = vrot.lane.b32.xlu2 %v2447_v0, %s2204_s8  ;;  %s2218_s8 = smov 38  }
  0x9d   : > { %1839 = vrot.lane.b32.xlu1 %v2466_v6, %s2205_s11 }
  0xa0   : > { %1834 = vrot.lane.b32.xlu0 %v1743_v3, %s2205_s11  ;;  %606 = vrot.lane.b32.xlu2 %v2447_v0, %s2205_s11  ;;  %s2219_s11 = smov 39  }
  0xa5   : > { %1849 = vrot.lane.b32.xlu1 %v2466_v6, %s2206_s0 }
  0xa8   : > { %1844 = vrot.lane.b32.xlu0 %v1743_v3, %s2206_s0  ;;  %639 = vrot.lane.b32.xlu2 %v2447_v0, %s2206_s0  ;;  %s2220_s0 = smov 117  }
  0xad   : > { %1859 = vrot.lane.b32.xlu1 %v2466_v6, %s2207_s25 }
  0xb0   : > { %1854 = vrot.lane.b32.xlu0 %v1743_v3, %s2207_s25  ;;  %672 = vrot.lane.b32.xlu2 %v2447_v0, %s2207_s25  ;;  %s2221_s25 = smov 118  }
  0xb2   : > { %v1760_v7 = vpop.permute.xlu2 %1759 }
  0xb3   : > { %v1762_v8 = vunpack.i.h.bf16 %v1760_v7  ;;  %v1761_v9 = vunpack.i.l.bf16 %v1760_v7 }
  0xb5   : > { %1869 = vrot.lane.b32.xlu1 %v2466_v6, %s2208_s6  ;;  %v2497_v11 = vsel %vm344_vm0, %v1761_v9, %v1762_v8 }
  0xb6   : > { %3161 = vst [vmem:[#allocation16_spill] sm:$0xff] %v2497_v11 }
  0xb8   : > { %1864 = vrot.lane.b32.xlu0 %v2466_v6, %s2209_s10  ;;  %1874 = vrot.lane.b32.xlu2 %v2493_v10, %s2209_s10 }
  0xba   : > { %v343_v12 = vpop.permute.xlu2 %342 }
  0xbb   : > { %v2504_v14 = vsel %vm344_vm0, %v1762_v8, %v343_v12 }
  0xbd   : > { %1884 = vrot.lane.b32.xlu1 %v2493_v10, %s2208_s6 }
  0xc0   : > { %1879 = vrot.lane.b32.xlu0 %v1878_v13, %s2210_s14  ;;  %1889 = vrot.lane.b32.xlu2 %v1888_v15, %s2210_s14 }
  0xc2   : > { %v376_v16 = vpop.permute.xlu2 %375 }
  0xc5   : > { %779 = vrot.lane.b32.xlu1 %v2513_v17, %s2209_s10 }
  0xc7   : > { %v310_v18 = vpop.permute.xlu1 %309 }
  0xc8   : > { %1894 = vrot.lane.b32.xlu0 %v2466_v6, %s2211_s5  ;;  %1899 = vrot.lane.b32.xlu2 %v2466_v6, %s2212_s24 }
  0xca   : > { %v2520_v19 = vpop.permute.xlu0 %1744  ;;  %v409_v20 = vpop.permute.xlu2 %408 }
  0xcb   : > { %v3130_v24 = vunpack.i.h.bf16 %v2520_v19 }
  0xcd   : > { %1904 = vrot.lane.b32.xlu1 %v2466_v6, %s2213_s27 }
  0xcf   : > { %v2524_v21 = vpop.permute.xlu1 %1754 }
  0xd0   : > { %746 = vrot.lane.b32.xlu0 %v2513_v17, %s2208_s6  ;;  %v3131_v22 = vunpack.i.h.bf16 %v2524_v21  ;;  %1909 = vrot.lane.b32.xlu2 %v2493_v10, %s2211_s5 }
  0xd2   : > { %v1750_v23 = vpop.permute.xlu0 %1749  ;;  %v442_v27 = vpop.permute.xlu2 %441  ;;  %v2534_v28 = vsel %vm344_vm0, %v3131_v22, %v1761_v9 }
  0xd3   : > { %v1752_v25 = vunpack.i.h.bf16 %v1750_v23  ;;  %v1751_v26 = vunpack.i.l.bf16 %v1750_v23 }
  0xd5   : > { %v2539_v29 = vsel %vm311_vm1, %v3130_v24, %v1751_v26  ;;  %v2542_v30 = vsel %vm311_vm1, %v1752_v25, %v310_v18  ;;  %v2545_v31 = vsel %vm311_vm1, %v1751_v26, %v1752_v25  ;;  %1919 = vrot.lane.b32.xlu1 %v2493_v10, %s2212_s24 }
  0xd6   : > { %3162 = vst [vmem:[#allocation17_spill] sm:$0xff] %v2545_v31 }
  0xd7   : > { %v1770_v32 = vpop.permute.xlu1 %1769 }
  0xd8   : > { %1914 = vrot.lane.b32.xlu0 %v2466_v6, %s2214_s22  ;;  %v1772_v33 = vunpack.i.h.bf16 %v1770_v32  ;;  %v1771_v34 = vunpack.i.l.bf16 %v1770_v32  ;;  %705 = vrot.lane.b32.xlu2 %v2447_v0, %s2210_s14  ;;  %s1629_s14 = sshll.u32 %s2348_s29, 5 }
  0xda   : > { %v2553_v35 = vpop.permute.xlu0 %1764  ;;  %v475_v37 = vpop.permute.xlu2 %474  ;;  %v2557_v38 = vsel %vm377_vm2, %v1772_v33, %v376_v16  ;;  %v2560_v39 = vsel %vm377_vm2, %v1771_v34, %v1772_v33 }
  0xdb   : > { %v3132_v36 = vunpack.i.h.bf16 %v2553_v35  ;;  %3163 = vst [vmem:[#allocation18_spill] sm:$0xff] %v2560_v39 }
  0xdd   : > { %v2565_v40 = vsel %vm377_vm2, %v3132_v36, %v1771_v34  ;;  %1929 = vrot.lane.b32.xlu1 %v2493_v10, %s2213_s27 }
  0xdf   : > { %v1780_v41 = vpop.permute.xlu1 %1779 }
  0xe0   : > { %1924 = vrot.lane.b32.xlu0 %v2466_v6, %s2215_s30  ;;  %v1782_v42 = vunpack.i.h.bf16 %v1780_v41  ;;  %v1781_v43 = vunpack.i.l.bf16 %v1780_v41  ;;  %1142 = vrot.lane.b32.xlu2 %v2513_v17, %s2211_s5 }
  0xe2   : > { %v2573_v44 = vpop.permute.xlu0 %1774  ;;  %v508_v46 = vpop.permute.xlu2 %507  ;;  %v2577_v47 = vsel %vm410_vm3, %v1782_v42, %v409_v20  ;;  %v2580_v48 = vsel %vm410_vm3, %v1781_v43, %v1782_v42 }
  0xe3   : > { %v3133_v45 = vunpack.i.h.bf16 %v2573_v44  ;;  %3164 = vst [vmem:[#allocation19_spill] sm:$0xff] %v2580_v48 }
  0xe5   : > { %v2585_v49 = vsel %vm410_vm3, %v3133_v45, %v1781_v43  ;;  %1939 = vrot.lane.b32.xlu1 %v2493_v10, %s2214_s22 }
  0xe7   : > { %v1790_v50 = vpop.permute.xlu1 %1789 }
  0xe8   : > { %1934 = vrot.lane.b32.xlu0 %v2466_v6, %s2216_s2  ;;  %v1792_v51 = vunpack.i.h.bf16 %v1790_v50  ;;  %v1791_v52 = vunpack.i.l.bf16 %v1790_v50  ;;  %1109 = vrot.lane.b32.xlu2 %v2513_v17, %s2212_s24 }
  0xea   : > { %v2593_v53 = vpop.permute.xlu0 %1784  ;;  %v541_v55 = vpop.permute.xlu2 %540  ;;  %v2597_v56 = vsel %vm443_vm4, %v1792_v51, %v442_v27  ;;  %v2600_v57 = vsel %vm443_vm4, %v1791_v52, %v1792_v51 }
  0xeb   : > { %v3135_v54 = vunpack.i.h.bf16 %v2593_v53  ;;  %3165 = vst [vmem:[#allocation20_spill] sm:$0xff] %v2600_v57 }
  0xed   : > { %v2605_v58 = vsel %vm443_vm4, %v3135_v54, %v1791_v52  ;;  %1949 = vrot.lane.b32.xlu1 %v2493_v10, %s2215_s30 }
  0xef   : > { %v1800_v59 = vpop.permute.xlu1 %1799 }
  0xf0   : > { %1944 = vrot.lane.b32.xlu0 %v2466_v6, %s2217_s7  ;;  %v1802_v60 = vunpack.i.h.bf16 %v1800_v59  ;;  %v1801_v61 = vunpack.i.l.bf16 %v1800_v59  ;;  %1076 = vrot.lane.b32.xlu2 %v2513_v17, %s2213_s27 }
  0xf2   : > { %v2613_v62 = vpop.permute.xlu0 %1794  ;;  %v574_v1 = vpop.permute.xlu2 %573  ;;  %v2617_v3 = vsel %vm476_vm5, %v1802_v60, %v475_v37  ;;  %v2620_v5 = vsel %vm476_vm5, %v1801_v61, %v1802_v60 }
  0xf3   : > { %v3136_v63 = vunpack.i.h.bf16 %v2613_v62  ;;  %3166 = vst [vmem:[#allocation21_spill] sm:$0xff] %v2620_v5 }
  0xf5   : > { %v2625_v7 = vsel %vm476_vm5, %v3136_v63, %v1801_v61  ;;  %1959 = vrot.lane.b32.xlu1 %v2493_v10, %s2216_s2 }
  0xf7   : > { %v1810_v8 = vpop.permute.xlu1 %1809 }
  0xf8   : > { %1954 = vrot.lane.b32.xlu0 %v2466_v6, %s2218_s8  ;;  %v1812_v9 = vunpack.i.h.bf16 %v1810_v8  ;;  %v1811_v12 = vunpack.i.l.bf16 %v1810_v8  ;;  %1043 = vrot.lane.b32.xlu2 %v2513_v17, %s2214_s22 }
  0xfa   : > { %v2633_v13 = vpop.permute.xlu0 %1804  ;;  %v607_v16 = vpop.permute.xlu2 %606  ;;  %v2637_v18 = vsel %vm509_vm6, %v1812_v9, %v508_v46  ;;  %v2640_v20 = vsel %vm509_vm6, %v1811_v12, %v1812_v9 }
  0xfb   : > { %v3137_v15 = vunpack.i.h.bf16 %v2633_v13  ;;  %3167 = vst [vmem:[#allocation22_spill] sm:$0xff] %v2640_v20 }
  0xfd   : > { %v2645_v23 = vsel %vm509_vm6, %v3137_v15, %v1811_v12  ;;  %1969 = vrot.lane.b32.xlu1 %v2493_v10, %s2217_s7 }
  0xff   : > { %v2649_v25 = vpop.permute.xlu1 %1819 }
 0x100   : > { %1964 = vrot.lane.b32.xlu0 %v2466_v6, %s2219_s11  ;;  %v1822_v26 = vunpack.i.h.bf16 %v2649_v25  ;;  %v3138_v27 = vunpack.i.l.bf16 %v2649_v25  ;;  %1010 = vrot.lane.b32.xlu2 %v2513_v17, %s2215_s30  ;;  %s1490_s30 = scalar_lea.sflag [#allocation6], %s228_s15 }
 0x102   : > { %v2657_v32 = vpop.permute.xlu0 %1814  ;;  %v2659_v33 = vpop.permute.xlu2 %639  ;;  %v2662_v34 = vsel %vm542_vm7, %v1822_v26, %v541_v55  ;;  %v2667_v37 = vsel %vm542_vm7, %v3138_v27, %v1822_v26 }
 0x103   : > { %3168 = vst [vmem:[#allocation23_spill] sm:$0xff] %v2667_v37 }
 0x105   : > { %1979 = vrot.lane.b32.xlu1 %v2493_v10, %s2218_s8 }
 0x107   : > { %v2671_v41 = vpop.permute.xlu1 %1829 }
 0x108   : > { %1974 = vrot.lane.b32.xlu0 %v2466_v6, %s2220_s0  ;;  %v1832_v42 = vunpack.i.h.bf16 %v2671_v41  ;;  %v3139_v43 = vunpack.i.l.bf16 %v2671_v41  ;;  %977 = vrot.lane.b32.xlu2 %v2513_v17, %s2216_s2 }
 0x10a   : > { %v2679_v46 = vpop.permute.xlu0 %1824  ;;  %v2681_v50 = vpop.permute.xlu2 %672  ;;  %v2684_v51 = vsel %vm575_vm8, %v1832_v42, %v574_v1  ;;  %v2689_v52 = vsel %vm575_vm8, %v3139_v43, %v1832_v42 }
 0x10b   : > { %3169 = vst [vmem:[#allocation24_spill] sm:$0xff] %v2689_v52 }
 0x10d   : > { %1989 = vrot.lane.b32.xlu1 %v2493_v10, %s2219_s11 }
 0x10f   : > { %v2693_v55 = vpop.permute.xlu1 %1839 }
 0x110   : > { %1984 = vrot.lane.b32.xlu0 %v2466_v6, %s2221_s25  ;;  %v1842_v59 = vunpack.i.h.bf16 %v2693_v55  ;;  %v3140_v60 = vunpack.i.l.bf16 %v2693_v55  ;;  %944 = vrot.lane.b32.xlu2 %v2513_v17, %s2217_s7 }
 0x112   : > { %v2700_v61 = vpop.permute.xlu0 %1834  ;;  %v2702_v1 = vpop.permute.xlu2 %1874  ;;  %v2705_v8 = vsel %vm608_vm9, %v1842_v59, %v607_v16  ;;  %v2710_v9 = vsel %vm608_vm9, %v3140_v60, %v1842_v59 }
 0x113   : > { %3170 = vst [vmem:[#allocation25_spill] sm:$0xff] %v2710_v9  ;;  %v3143_v63 = vunpack.i.h.bf16 %v2702_v1  ;;  %v1876_v15 = vunpack.i.l.bf16 %v2702_v1 }
 0x115   : > { %911 = vrot.lane.b32.xlu1 %v2513_v17, %s2218_s8 }
 0x117   : > { %v2714_v6 = vpop.permute.xlu1 %1849 }
 0x118   : > { %1994 = vrot.lane.b32.xlu0 %v2493_v10, %s2220_s0  ;;  %v3134_v12 = vunpack.i.h.bf16 %v2714_v6  ;;  %v3141_v26 = vunpack.i.l.bf16 %v2714_v6  ;;  %1999 = vrot.lane.b32.xlu2 %v2493_v10, %s2221_s25 }
 0x11a   : > { %v2721_v16 = vpop.permute.xlu0 %1844  ;;  %v2723_v42 = vpop.permute.xlu2 %1889  ;;  %v2730_v59 = vsel %vm641_vm10, %v3141_v26, %v3134_v12 }
 0x11b   : > { %3171 = vst [vmem:[#allocation26_spill] sm:$0xff] %v2730_v59 }
 0x11d   : > { %845 = vrot.lane.b32.xlu1 %v2513_v17, %s2220_s0 }
 0x11f   : > { %v2734_v24 = vpop.permute.xlu1 %1859 }
 0x120   : > { %878 = vrot.lane.b32.xlu0 %v2513_v17, %s2219_s11  ;;  %v3142_v10 = vunpack.i.h.bf16 %v2734_v24  ;;  %v1861_v22 = vunpack.i.l.bf16 %v2734_v24  ;;  %812 = vrot.lane.b32.xlu2 %v2513_v17, %s2221_s25  ;;  %s2115_s11 = scalar_lea.hbm %s3128_s4, 128 }
 0x122   : > { %v1855_v36 = vpop.permute.xlu0 %1854  ;;  %v2741_v45 = vpop.permute.xlu2 %1899  ;;  %v2746_v12 = vsel %vm3145_vm11, %v1861_v22, %v3142_v10 }
 0x123   : > { %v1857_v5 = vunpack.i.h.bf16 %v1855_v36  ;;  %v1856_v37 = vunpack.i.l.bf16 %v1855_v36  ;;  %v1827_v36 = vunpack.i.h.bf16 %v2679_v46 }
 0x127   : > { %v1870_v54 = vpop.permute.xlu1 %1869 }
 0x128   : > { %v1872_v27 = vunpack.i.h.bf16 %v1870_v54  ;;  %v1871_v43 = vunpack.i.l.bf16 %v1870_v54 }
 0x12a   : > { %v1865_v60 = vpop.permute.xlu0 %1864  ;;  %v2750_v31 = vpop.permute.xlu2 %1909  ;;  %v750_v10 = vsel %vm748_vm13, %v1871_v43, %v1872_v27 }
 0x12b   : > { %v1867_v17 = vunpack.i.h.bf16 %v1865_v60  ;;  %v1866_v26 = vunpack.i.l.bf16 %v1865_v60  ;;  %v1847_v60 = vunpack.i.h.bf16 %v2721_v16 }
 0x12d   : > { %v782_v11 = vsel %vm781_vm12, %v1876_v15, %v1866_v26  ;;  %v783_v39 = vsel %vm781_vm12, %v1866_v26, %v1867_v17  ;;  %v2758_v48 = vsel %vm781_vm12, %v1867_v17, %v3143_v63  ;;  %v1891_v26 = vunpack.i.l.bf16 %v2723_v42 }
 0x12e   : > { %1313 = vmatpush.msra.mxu0 %v782_v11  ;;  %1353 = vmatpush.msra.mxu2 %v783_v39 }
 0x12f   : > { %v2760_v54 = vpop.permute.xlu1 %1884 }
 0x130   : > { %1354 = vmatpush.msra.mxu2 %v750_v10  ;;  %v3144_v57 = vunpack.i.h.bf16 %v2760_v54  ;;  %v1886_v15 = vunpack.i.l.bf16 %v2760_v54 }
 0x132   : > { %v1880_v20 = vpop.permute.xlu0 %1879  ;;  %1355 = vmatpush.msra.mxu2 %v2459_v4  ;;  %v749_v11 = vsel %vm748_vm13, %v1886_v15, %v1871_v43  ;;  %v2768_v39 = vpop.permute.xlu2 %705  ;;  %v2773_v10 = vsel %vm748_vm13, %v1872_v27, %v3144_v57  ;;  %v3172_v4 = vunpack.i.h.bf16 %v2723_v42  ;;  %v1846_v43 = vunpack.i.l.bf16 %v2721_v16 }
 0x133   : > { %v1882_v17 = vunpack.i.h.bf16 %v1880_v20  ;;  %v1881_v63 = vunpack.i.l.bf16 %v1880_v20  ;;  %1314 = vmatpush.msra.mxu0 %v749_v11  ;;  %v1837_v20 = vunpack.i.h.bf16 %v2700_v61  ;;  %v676_v15 = vsel %vm3145_vm11, %v1857_v5, %v1861_v22 }
 0x134   : > { %v1826_v11 = vunpack.i.l.bf16 %v2679_v46  ;;  %v1836_v57 = vunpack.i.l.bf16 %v2700_v61  ;;  %v1901_v46 = vunpack.i.l.bf16 %v2741_v45  ;;  %v3174_v61 = vunpack.i.l.bf16 %v2693_v55 }
 0x135   : > { %v709_v52 = vsel %vm707_vm14, %v1881_v63, %v1882_v17  ;;  %v2780_v9 = vsel %vm707_vm14, %v1882_v17, %v3172_v4  ;;  %1315 = vmatpush.msra.mxu0 %v2453_v2  ;;  %v708_v27 = vsel %vm707_vm14, %v1891_v26, %v1881_v63  ;;  %v1912_v17 = vunpack.i.h.bf16 %v2750_v31 }
 0x136   : > { %1356 = vmatpush.msra.mxu2 %v709_v52  ;;  %v1911_v2 = vunpack.i.l.bf16 %v2750_v31  ;;  %v675_v52 = vsel %vm3145_vm11, %v1856_v37, %v1857_v5  ;;  %v3173_v63 = vunpack.i.l.bf16 %v2714_v6  ;;  %v610_v4 = vsel %vm608_vm9, %v1837_v20, %v3174_v61 }
 0x137   : > { %v2790_v59 = vpop.permute.xlu1 %779  ;;  %1316 = vmatpush.msra.mxu0 %v708_v27  ;;  %v642_v5 = vsel %vm641_vm10, %v1846_v43, %v1847_v60  ;;  %vm1111_vm11 = vcmask 146432   ;;  %v1816_v16 = vunpack.i.l.bf16 %v2657_v32 }
 0x138   : > { %1357 = vmatpush.msra.mxu2 %v676_v15  ;;  %v643_v22 = vsel %vm641_vm10, %v1847_v60, %v3173_v63  ;;  %v1817_v63 = vunpack.i.h.bf16 %v2657_v32  ;;  %v3175_v60 = vunpack.i.l.bf16 %v2671_v41  ;;  %v3176_v32 = vunpack.i.h.bf16 %v2741_v45 }
 0x139   : > { %1317 = vmatpush.msra.mxu0 %v675_v52  ;;  %v609_v52 = vsel %vm608_vm9, %v1836_v57, %v1837_v20  ;;  %v1806_v20 = vunpack.i.l.bf16 %v2633_v13  ;;  %vm1078_vm9 = vcmask 154624  }
 0x13a   : > { %v1895_v26 = vpop.permute.xlu0 %1894  ;;  %1358 = vmatpush.msra.mxu2 %v643_v22  ;;  %v2804_v37 = vpop.permute.xlu2 %1142  ;;  %v577_v43 = vsel %vm575_vm8, %v1827_v36, %v3175_v60  ;;  %v1113_v57 = vsel %vm1111_vm11, %v1901_v46, %v3176_v32 }
 0x13b   : > { %v1897_v27 = vunpack.i.h.bf16 %v1895_v26  ;;  %v1896_v15 = vunpack.i.l.bf16 %v1895_v26  ;;  %1318 = vmatpush.msra.mxu0 %v642_v5 }
 0x13c   : > { %1359 = vmatpush.msra.mxu2 %v610_v4  ;;  %v3177_v4 = vunpack.i.l.bf16 %v2649_v25  ;;  %v3178_v25 = vunpack.i.h.bf16 %v2633_v13  ;;  %v1766_v13 = vunpack.i.l.bf16 %v2553_v35 }
 0x13d   : > { %v1145_v55 = vsel %vm1144_vm15, %v1911_v2, %v1896_v15  ;;  %v1146_v22 = vsel %vm1144_vm15, %v1896_v15, %v1897_v27  ;;  %v2814_v26 = vsel %vm1144_vm15, %v1897_v27, %v1912_v17  ;;  %1319 = vmatpush.msra.mxu0 %v609_v52  ;;  %v576_v2 = vsel %vm575_vm8, %v1826_v11, %v1827_v36 }
 0x13e   : > { %1338 = vmatpush.msra.mxu1 %v1145_v55  ;;  %1360 = vmatpush.msra.mxu2 %v577_v43  ;;  %v544_v41 = vsel %vm542_vm7, %v1817_v63, %v3177_v4  ;;  %v1796_v27 = vunpack.i.l.bf16 %v2613_v62  ;;  %v543_v52 = vsel %vm542_vm7, %v1816_v16, %v1817_v63  ;;  %v1786_v36 = vunpack.i.l.bf16 %v2593_v53 }
 0x13f   : > { %1378 = vmatpush.msra.mxu3 %v1146_v22  ;;  %v2826_v61 = vpop.permute.xlu1 %1904  ;;  %1320 = vmatpush.msra.mxu0 %v576_v2  ;;  %v510_v11 = vsel %vm509_vm6, %v1806_v20, %v3178_v25  ;;  %v1776_v16 = vunpack.i.l.bf16 %v2573_v44  ;;  %v3179_v63 = vunpack.i.h.bf16 %v2613_v62  ;;  %v3180_v43 = vunpack.i.h.bf16 %v2593_v53 }
 0x140   : > { %v1907_v15 = vunpack.i.h.bf16 %v2826_v61  ;;  %v1906_v5 = vunpack.i.l.bf16 %v2826_v61  ;;  %1361 = vmatpush.msra.mxu2 %v544_v41  ;;  %v1756_v20 = vunpack.i.l.bf16 %v2524_v21  ;;  %v3181_v62 = vunpack.i.h.bf16 %v2573_v44 }
 0x141   : > { %1379 = vmatpush.msra.mxu3 %v1113_v57  ;;  %1321 = vmatpush.msra.mxu0 %v543_v52  ;;  %v444_v32 = vsel %vm443_vm4, %v1786_v36, %v3180_v43  ;;  %v1746_v41 = vunpack.i.l.bf16 %v2520_v19  ;;  %v3182_v52 = vunpack.i.h.bf16 %v2553_v35  ;;  %v3183_v25 = vunpack.i.h.bf16 %v2741_v45 }
 0x142   : > { %v747_v55 = vpop.permute.xlu0 %746  ;;  %1362 = vmatpush.msra.mxu2 %v2645_v23  ;;  %v1080_v22 = vsel %vm1078_vm9, %v1906_v5, %v1907_v15  ;;  %v1110_v60 = vpop.permute.xlu2 %1109  ;;  %v477_v23 = vsel %vm476_vm5, %v1796_v27, %v3179_v63  ;;  %vm1045_vm5 = vcmask 220160   ;;  %v1148_v45 = vsel %vm1144_vm15, %v1912_v17, %v2804_v37 }
 0x143   : > { %1322 = vmatpush.msra.mxu0 %v510_v11  ;;  %1380 = vmatpush.msra.mxu3 %v1080_v22  ;;  %v3186_v63 = vunpack.i.h.bf16 %v2702_v1  ;;  %v3187_v17 = vunpack.i.h.bf16 %v2760_v54  ;;  %v3189_v61 = vunpack.i.h.bf16 %v2734_v24  ;;  %vm913_vm4 = vcmask 310272  }
 0x144   : > { %1363 = vmatpush.msra.mxu2 %v2625_v7  ;;  %v411_v7 = vsel %vm410_vm3, %v1776_v16, %v3181_v62  ;;  %vm946_vm3 = vcmask 302080   ;;  %vm880_vm6 = vcmask 318464   ;;  %vm847_vm7 = vcmask 957440  }
 0x145   : > { %1323 = vmatpush.msra.mxu0 %v477_v23  ;;  %v785_v23 = vsel %vm781_vm12, %v3186_v63, %v2790_v59  ;;  %vm814_vm8 = vcmask 965632  }
 0x146   : > { %1364 = vmatpush.msra.mxu2 %v2605_v58 }
 0x147   : > { %v1920_v57 = vpop.permute.xlu1 %1919  ;;  %1324 = vmatpush.msra.mxu0 %v444_v32 }
 0x148   : > { %v1922_v2 = vunpack.i.h.bf16 %v1920_v57  ;;  %v1921_v4 = vunpack.i.l.bf16 %v1920_v57  ;;  %1365 = vmatpush.msra.mxu2 %v2585_v49  ;;  %v378_v49 = vsel %vm377_vm2, %v1766_v13, %v3182_v52  ;;  %vm979_vm2 = vcmask 236544  }
 0x149   : > { %1325 = vmatpush.msra.mxu0 %v411_v7 }
 0x14a   : > { %v2861_v27 = vpop.permute.xlu0 %1914  ;;  %1366 = vmatpush.msra.mxu2 %v2565_v40  ;;  %v1112_v44 = vsel %vm1111_vm11, %v1921_v4, %v1901_v46  ;;  %v1077_v36 = vpop.permute.xlu2 %1076  ;;  %v2875_v11 = vsel %vm1111_vm11, %v3183_v25, %v1922_v2  ;;  %v3184_v40 = vunpack.i.h.bf16 %v2524_v21  ;;  %v3185_v46 = vunpack.i.h.bf16 %v2520_v19 }
 0x14b   : > { %v1917_v53 = vunpack.i.h.bf16 %v2861_v27  ;;  %v1916_v58 = vunpack.i.l.bf16 %v2861_v27  ;;  %1326 = vmatpush.msra.mxu0 %v378_v49  ;;  %1339 = vmatpush.msra.mxu1 %v1112_v44  ;;  %v1115_v21 = vsel %vm1111_vm11, %v1922_v2, %v1110_v60  ;;  %v752_v19 = vsel %vm748_vm13, %v3187_v17, %v747_v55 }
 0x14c   : > { %1367 = vmatpush.msra.mxu2 %v2534_v28  ;;  %v345_v35 = vsel %vm344_vm0, %v1756_v20, %v3184_v40  ;;  %v312_v28 = vsel %vm311_vm1, %v1746_v41, %v3185_v46  ;;  %vm1012_vm0 = vcmask 228352   ;;  %vm3190_vm1 = vcmask 72704  }
 0x14d   : > { %v1047_v22 = vsel %vm1045_vm5, %v1916_v58, %v1917_v53  ;;  %1327 = vmatpush.msra.mxu0 %v345_v35 }
 0x14e   : > { %1381 = vmatpush.msra.mxu3 %v1047_v22  ;;  %1368 = vmatpush.msra.mxu2 %v2539_v29 }
 0x14f   : > { %v1930_v16 = vpop.permute.xlu1 %1929  ;;  %1328 = vmatpush.msra.mxu0 %v312_v28 }
 0x150   : > { %1458 = vmatpush.msrb.mxu2 %v1148_v45  ;;  %v1932_v29 = vunpack.i.h.bf16 %v1930_v16  ;;  %v1931_v13 = vunpack.i.l.bf16 %v1930_v16 }
 0x151   : > { %1433 = vmatpush.msrb.mxu0 %v785_v23 }
 0x152   : > { %v2897_v31 = vpop.permute.xlu0 %1924  ;;  %1459 = vmatpush.msrb.mxu2 %v1115_v21  ;;  %v1079_v1 = vsel %vm1078_vm9, %v1931_v13, %v1906_v5  ;;  %v1082_v59 = vsel %vm1078_vm9, %v1932_v29, %v1077_v36  ;;  %v1044_v43 = vpop.permute.xlu2 %1043  ;;  %v2911_v54 = vsel %vm1078_vm9, %v1907_v15, %v1932_v29  ;;  %v3188_v5 = vunpack.i.h.bf16 %v2723_v42 }
 0x153   : > { %v1927_v37 = vunpack.i.h.bf16 %v2897_v31  ;;  %v1926_v60 = vunpack.i.l.bf16 %v2897_v31  ;;  %1434 = vmatpush.msrb.mxu0 %v752_v19  ;;  %1340 = vmatpush.msra.mxu1 %v1079_v1  ;;  %v678_v15 = vsel %vm3190_vm1, %v3189_v61, %v2681_v50  ;;  %v3191_v42 = vunpack.i.h.bf16 %v2714_v6 }
 0x154   : > { %1460 = vmatpush.msrb.mxu2 %v1082_v59  ;;  %v711_v32 = vsel %vm707_vm14, %v3188_v5, %v2768_v39 }
 0x155   : > { %1435 = vmatpush.msrb.mxu0 %v2447_v0  ;;  %v1014_v55 = vsel %vm1012_vm0, %v1926_v60, %v1927_v37  ;;  %v645_v39 = vsel %vm641_vm10, %v3191_v42, %v2659_v33 }
 0x156   : > { %1382 = vmatpush.msra.mxu3 %v1014_v55  ;;  %v3010_v55 = vld [vmem:[#allocation4] sm:$0xff] }
 0x157   : > { %1436 = vmatpush.msrb.mxu0 %v711_v32  ;;  %v2921_v57 = vpop.permute.xlu1 %1939  ;;  %1369 = vmatmul.f32.vlgmr.msra.gmra.mxu2 %v3010_v55 }
 0x158   : > { %v1942_v0 = vunpack.i.h.bf16 %v2921_v57  ;;  %v1941_v20 = vunpack.i.l.bf16 %v2921_v57  ;;  %1329 = vmatmul.f32.vlgmr.msra.gmra.mxu0 %v3010_v55 }
 0x159   : > { %1437 = vmatpush.msrb.mxu0 %v678_v15 }
 0x15a   : > { %v2929_v2 = vpop.permute.xlu0 %1934  ;;  %v1046_v24 = vsel %vm1045_vm5, %v1941_v20, %v1916_v58  ;;  %v1049_v50 = vsel %vm1045_vm5, %v1942_v0, %v1044_v43  ;;  %v1011_v7 = vpop.permute.xlu2 %1010 }
 0x15b   : > { %v1937_v4 = vunpack.i.h.bf16 %v2929_v2  ;;  %v1936_v62 = vunpack.i.l.bf16 %v2929_v2  ;;  %1438 = vmatpush.msrb.mxu0 %v645_v39  ;;  %1341 = vmatpush.msra.mxu1 %v1046_v24 }
 0x15c   : > { %1461 = vmatpush.msrb.mxu2 %v1049_v50 }
 0x15d   : > { %1439 = vmatpush.msrb.mxu0 %v2705_v8  ;;  %v981_v33 = vsel %vm979_vm2, %v1936_v62, %v1937_v4 }
 0x15e   : > { %1383 = vmatpush.msra.mxu3 %v981_v33 }
 0x15f   : > { %1440 = vmatpush.msrb.mxu0 %v2684_v51  ;;  %v2946_v6 = vpop.permute.xlu1 %1949 }
 0x160   : > { %v1952_v41 = vunpack.i.h.bf16 %v2946_v6  ;;  %v1951_v58 = vunpack.i.l.bf16 %v2946_v6 }
 0x161   : > { %1441 = vmatpush.msrb.mxu0 %v2662_v34 }
 0x162   : > { %v2951_v52 = vpop.permute.xlu0 %1944  ;;  %v1013_v44 = vsel %vm1012_vm0, %v1951_v58, %v1926_v60  ;;  %v1016_v51 = vsel %vm1012_vm0, %v1952_v41, %v1011_v7  ;;  %v978_v36 = vpop.permute.xlu2 %977 }
 0x163   : > { %v1947_v8 = vunpack.i.h.bf16 %v2951_v52  ;;  %v1946_v49 = vunpack.i.l.bf16 %v2951_v52  ;;  %1442 = vmatpush.msrb.mxu0 %v2637_v18  ;;  %1342 = vmatpush.msra.mxu1 %v1013_v44 }
 0x164   : > { %1462 = vmatpush.msrb.mxu2 %v1016_v51 }
 0x165   : > { %1443 = vmatpush.msrb.mxu0 %v2617_v3  ;;  %v948_v34 = vsel %vm946_vm3, %v1946_v49, %v1947_v8 }
 0x166   : > { %1384 = vmatpush.msra.mxu3 %v948_v34  ;;  %v2222_v34 = vmov 0  }
 0x167   : > { %1444 = vmatpush.msrb.mxu0 %v2597_v56  ;;  %v2965_v25 = vpop.permute.xlu1 %1959  ;;  %2003 = vset.pattern.permute.xlu0 %v2222_v34 }
 0x168   : > { %v1962_v18 = vunpack.i.h.bf16 %v2965_v25  ;;  %v1961_v40 = vunpack.i.l.bf16 %v2965_v25 }
 0x169   : > { %1445 = vmatpush.msrb.mxu0 %v2577_v47 }
 0x16a   : > { %v2970_v35 = vpop.permute.xlu0 %1954  ;;  %v980_v45 = vsel %vm979_vm2, %v1961_v40, %v1936_v62  ;;  %v983_v56 = vsel %vm979_vm2, %v1962_v18, %v978_v36  ;;  %v1178_v62 = vld [vmem:[#allocation4 + $0x8] sm:$0xff]  ;;  %v3192_v40 = vld [vmem:[#allocation26_spill] sm:$0xff] }
 0x16b   : > { %v1957_v3 = vunpack.i.h.bf16 %v2970_v35  ;;  %v1956_v22 = vunpack.i.l.bf16 %v2970_v35  ;;  %1446 = vmatpush.msrb.mxu0 %v2557_v38  ;;  %1343 = vmatpush.msra.mxu1 %v980_v45  ;;  %v945_v38 = vpop.permute.xlu2 %944  ;;  %v2004_v36 = vld [vmem:[%s2431_s26 + $0x18] sm:$0xff]  ;;  %v3193_v35 = vld [vmem:[#allocation25_spill] sm:$0xff]  ;;  %s270_s26 = scalar_lea.vmem [#allocation10], %s2428_s13  ;;  %s1501_s13 = scalar_lea.hbm %s3128_s4, %s1629_s14 }
 0x16c   : > { %1463 = vmatpush.msrb.mxu2 %v983_v56  ;;  %v3197_v45 = vld [vmem:[#allocation21_spill] sm:$0xff]  ;;  %v3198_v56 = vld [vmem:[#allocation20_spill] sm:$0xff]  ;;  %s1503_s27 = sshll.u32 %s270_s26, 4  ;;  %s1505_s22 = sshll.u32 %s1501_s13, 4  ;;  %s1504_s27 = int_to_ptr.vmem [resolvable:$true] %s1503_s27  ;;  %s1506_s22 = int_to_ptr.hbm [resolvable:$true] %s1505_s22 }
 0x16d   : > { %1447 = vmatpush.msrb.mxu0 %v2504_v14  ;;  %v915_v47 = vsel %vm913_vm4, %v1956_v22, %v1957_v3  ;;  %s2109_s29 = sshra.s32 %s1506_s22, 4  ;;  %s2110_s29 = int_to_ptr.hbm [resolvable:$true] %s2109_s29 }
 0x16e   : > { %1385 = vmatpush.msra.mxu3 %v915_v47  ;;  %v3200_v47 = vld [vmem:[#allocation18_spill] sm:$0xff]  ;;  %s2111_s2 = scalar_lea.hbm %s2110_s29, 32  ;;  %p2116_p3 = scmp.lt.s32.totalorder %s2110_s29, %s3128_s4 }
 0x16f   : > { %1448 = vmatpush.msrb.mxu0 %v2542_v30  ;;  %v2984_v46 = vpop.permute.xlu1 %1969  ;;  %p2112_p9 = scmp.ne.s32.totalorder %s2110_s29, %s2111_s2  ;;  %p2117_p4 = scmp.lt.s32.totalorder %s2115_s11, %s2111_s2 }
 0x170   : > { %v1972_v28 = vunpack.i.h.bf16 %v2984_v46  ;;  %v1971_v21 = vunpack.i.l.bf16 %v2984_v46  ;;  %1449 = vmatmul.f32.vlgmr.msrb.gmra.mxu0 %v3010_v55  ;;  %v3201_v46 = vld [vmem:[#allocation16_spill] sm:$0xff] }
 0x171   : > { %p2113_p13 = pnand %p2112_p9, %p2373_p0  ;;  %p2118_p10 = por %p2117_p4, %p2116_p3 }
 0x172   : > { %v2988_v16 = vpop.permute.xlu0 %1964  ;;  %v947_v23 = vsel %vm946_vm3, %v1971_v21, %v1946_v49  ;;  %v950_v30 = vsel %vm946_vm3, %v1972_v28, %v945_v38  ;;  %v3202_v38 = vld [vmem:[#allocation17_spill] sm:$0xff] }
 0x173   : > { %v1967_v63 = vunpack.i.h.bf16 %v2988_v16  ;;  %v1966_v14 = vunpack.i.l.bf16 %v2988_v16  ;;  %1344 = vmatpush.msra.mxu1 %v947_v23  ;;  %1464 = vmatpush.msrb.mxu2 %v950_v30  ;;  %v2000_v50 = vpop.permute.xlu2 %1999  ;;  %p2114_p8 = pneg %p2113_p13 }
 0x174   : > { %v2001_v49 = vunpack.i.l.bf16 %v2000_v50 }
 0x175   : > { %v882_v29 = vsel %vm880_vm6, %v1966_v14, %v1967_v63  ;;  %p2119_p2 = pnand %p2118_p10, %p2114_p8 }
 0x176   : > { %1386 = vmatpush.msra.mxu3 %v882_v29 }
 0x177   : > { %v2999_v13 = vpop.permute.xlu1 %1979 }
 0x178   : > { %v1981_v17 = vunpack.i.l.bf16 %v2999_v13  ;;  %v1982_v24 = vunpack.i.h.bf16 %v2999_v13 }
 0x17a   : > { %v3002_v19 = vpop.permute.xlu0 %1974  ;;  %v914_v59 = vsel %vm913_vm4, %v1981_v17, %v1956_v22  ;;  %v3196_v22 = vld [vmem:[#allocation22_spill] sm:$0xff] }
 0x17b   : > { %v1977_v60 = vunpack.i.h.bf16 %v3002_v19  ;;  %v1976_v1 = vunpack.i.l.bf16 %v3002_v19  ;;  %1345 = vmatpush.msra.mxu1 %v914_v59 }
 0x17d   : > { %v849_v43 = vsel %vm847_vm7, %v1976_v1, %v1977_v60 }
 0x17e   : > { %1387 = vmatpush.msra.mxu3 %v849_v43 }
 0x17f   : > { %v1990_v5 = vpop.permute.xlu1 %1989 }
 0x180   : > { %v1991_v32 = vunpack.i.l.bf16 %v1990_v5  ;;  %v1992_v57 = vunpack.i.h.bf16 %v1990_v5 }
 0x182   : > { %v3014_v61 = vpop.permute.xlu0 %1984  ;;  %v881_v42 = vsel %vm880_vm6, %v1991_v32, %v1966_v14 }
 0x183   : > { %v1987_v15 = vunpack.i.h.bf16 %v3014_v61  ;;  %v1986_v20 = vunpack.i.l.bf16 %v3014_v61  ;;  %1346 = vmatpush.msra.mxu1 %v881_v42 }
 0x185   : > { %v816_v39 = vsel %vm814_vm8, %v1986_v20, %v1987_v15  ;;  %v815_v27 = vsel %vm814_vm8, %v2001_v49, %v1986_v20 }
 0x186   : > { %1388 = vmatpush.msra.mxu3 %v816_v39 }
 0x187   : > { %v912_v7 = vpop.permute.xlu1 %911  ;;  %1389 = vmatmul.f32.vlgmr.msra.gmra.mxu3 %v1178_v62 }
 0x188   : > { %1418 = vmatpush.msrb.mxu3 %v2814_v26  ;;  %v917_v33 = vsel %vm913_vm4, %v1982_v24, %v912_v7  ;;  %v1048_v26 = vsel %vm1045_vm5, %v1917_v53, %v1942_v0  ;;  %v982_v53 = vsel %vm979_vm2, %v1937_v4, %v1962_v18  ;;  %v949_v0 = vsel %vm946_vm3, %v1947_v8, %v1972_v28  ;;  %v813_v4 = vpop.permute.xlu2 %812 }
 0x189   : > { %1465 = vmatpush.msrb.mxu2 %v917_v33 }
 0x18a   : > { %1419 = vmatpush.msrb.mxu3 %v2875_v11  ;;  %v1995_v58 = vpop.permute.xlu0 %1994  ;;  %v1307_v11 = vld [vmem:[%s3125_s1] sm:$0xff] }
 0x18b   : > { %v1996_v44 = vunpack.i.l.bf16 %v1995_v58  ;;  %1310 = vperm.xlu0 %2003, %v1307_v11   ;;  %v1997_v6 = vunpack.i.h.bf16 %v1995_v58 }
 0x18c   : > { %1420 = vmatpush.msrb.mxu3 %v2911_v54  ;;  %v1015_v54 = vsel %vm1012_vm0, %v1927_v37, %v1952_v41  ;;  %v2002_v41 = vunpack.i.h.bf16 %v2000_v50 }
 0x18d   : > { %v848_v51 = vsel %vm847_vm7, %v1996_v44, %v1976_v1  ;;  %v850_v25 = vsel %vm847_vm7, %v1977_v60, %v1997_v6 }
 0x18e   : > { %1421 = vmatpush.msrb.mxu3 %v1048_v26  ;;  %1347 = vmatpush.msra.mxu1 %v848_v51  ;;  %v818_v8 = vsel %vm814_vm8, %v2002_v41, %v813_v4  ;;  %v817_v18 = vsel %vm814_vm8, %v1987_v15, %v2002_v41 }
 0x18f   : > { %v846_v31 = vpop.permute.xlu1 %845 }
 0x190   : > { %1422 = vmatpush.msrb.mxu3 %v1015_v54  ;;  %1348 = vmatpush.msra.mxu1 %v815_v27  ;;  %v851_v52 = vsel %vm847_vm7, %v1997_v6, %v846_v31 }
 0x191   : > { %1349 = vmatmul.f32.vlgmr.msra.gmra.mxu1 %v1178_v62 }
 0x192   : > { %1393 = vmatpush.msrb.mxu1 %v2758_v48  ;;  %1423 = vmatpush.msrb.mxu3 %v982_v53  ;;  %v879_v37 = vpop.permute.xlu0 %878  ;;  %v916_v48 = vsel %vm913_vm4, %v1957_v3, %v1982_v24  ;;  %v3195_v3 = vld [vmem:[#allocation23_spill] sm:$0xff] }
 0x193   : > { %v884_v2 = vsel %vm880_vm6, %v1992_v57, %v879_v37 }
 0x194   : > { %1394 = vmatpush.msrb.mxu1 %v2773_v10  ;;  %1424 = vmatpush.msrb.mxu3 %v949_v0  ;;  %v883_v10 = vsel %vm880_vm6, %v1967_v63, %v1992_v57 }
 0x195   : > { %1466 = vmatpush.msrb.mxu2 %v884_v2 }
 0x196   : > { %1395 = vmatpush.msrb.mxu1 %v2004_v36  ;;  %1425 = vmatpush.msrb.mxu3 %v916_v48 }
 0x197   : > { %1467 = vmatpush.msrb.mxu2 %v851_v52 }
 0x198   : > { %1396 = vmatpush.msrb.mxu1 %v2780_v9  ;;  %1426 = vmatpush.msrb.mxu3 %v883_v10  ;;  %v3194_v9 = vld [vmem:[#allocation24_spill] sm:$0xff] }
 0x199   : > { %1468 = vmatpush.msrb.mxu2 %v818_v8 }
 0x19a   : > { %1397 = vmatpush.msrb.mxu1 %v2746_v12  ;;  %1427 = vmatpush.msrb.mxu3 %v850_v25  ;;  %v3199_v12 = vld [vmem:[#allocation19_spill] sm:$0xff] }
 0x19b   : > { %1469 = vmatmul.f32.vlgmr.msrb.gmra.mxu2 %v1178_v62 }
 0x19c   : > { %1398 = vmatpush.msrb.mxu1 %v3192_v40  ;;  %1428 = vmatpush.msrb.mxu3 %v817_v18 }
 0x19d   : > { %1429 = vmatmul.f32.vlgmr.msrb.gmra.mxu3 %v1178_v62 }
 0x19e   : > { %1399 = vmatpush.msrb.mxu1 %v3193_v35 }
 0x1a0   : > { %1400 = vmatpush.msrb.mxu1 %v3194_v9 }
 0x1a2   : > { %1401 = vmatpush.msrb.mxu1 %v3195_v3 }
 0x1a4   : > { %1402 = vmatpush.msrb.mxu1 %v3196_v22 }
 0x1a6   : > { %1403 = vmatpush.msrb.mxu1 %v3197_v45 }
 0x1a8   : > { %1404 = vmatpush.msrb.mxu1 %v3198_v56 }
 0x1aa   : > { %1405 = vmatpush.msrb.mxu1 %v3199_v12 }
 0x1ac   : > { %1406 = vmatpush.msrb.mxu1 %v3200_v47 }
 0x1ae   : > { %1407 = vmatpush.msrb.mxu1 %v3201_v46 }
 0x1b0   : > { %1408 = vmatpush.msrb.mxu1 %v3202_v38 }
 0x1b1   : > { %1409 = vmatmul.f32.vlgmr.msrb.gmra.mxu1 %v3010_v55 }
 0x1d5   : > { %v1330_v63 = vpop.f32.mrf.mxu0 }
 0x1da   : > { %v1370_v28 = vpop.f32.mrf.mxu2 }
 0x1ed   : > { %v1450_v59 = vpop.f32.mrf.mxu0 }
 0x1fd   : > { %v1311_v21 = vpop.permute.xlu0 %1310 }
 0x1fe   : > { %v1371_v16 = vadd.f32 %v1370_v28, %v1311_v21  ;;  %v1331_v23 = vadd.f32 %v1330_v63, %v1311_v21  ;;  %v1451_v43 = vadd.f32 %v1450_v59, %v1311_v21 }
 0x20a   : > { %v1390_v14 = vpop.f32.mrf.mxu3 }
 0x20b   : > { %v1391_v30 = vadd.f32 %v1390_v14, %v1371_v16 }
 0x20d   : > { %vm1474_vm10 = vcmp.ge.f32.partialorder %v1391_v30, 0.0  ;;  %v1478_v29 = vmul.f32 0.1, %v1391_v30 }
 0x20e   : > { %v1350_v13 = vpop.f32.mrf.mxu1 }
 0x20f   : > { %v1351_v17 = vadd.f32 %v1350_v13, %v1331_v23  ;;  %v1482_v19 = vsel %vm1474_vm10, %v1391_v30, %v1478_v29 }
 0x210   : > { %1486 = vst [vmem:[%s270_s26 + $0x8] sm:$0xff] %v1482_v19 }
 0x211   : > { %vm1473_vm11 = vcmp.ge.f32.partialorder %v1351_v17, 0.0  ;;  %v1477_v60 = vmul.f32 0.1, %v1351_v17 }
 0x213   : > { %v1481_v1 = vsel %vm1473_vm11, %v1351_v17, %v1477_v60 }
 0x214   : > { %1485 = vst [vmem:[%s270_s26] sm:$0xff] %v1481_v1 }
 0x21e   : > { %v1470_v55 = vpop.f32.mrf.mxu2 }
 0x21f   : > { %v1471_v5 = vadd.f32 %v1470_v55, %v1451_v43 }
 0x220   : > { %v1430_v20 = vpop.f32.mrf.mxu3 }
 0x221   : > { %vm1476_vm12 = vcmp.ge.f32.partialorder %v1471_v5, 0.0  ;;  %v1480_v32 = vmul.f32 0.1, %v1471_v5 }
 0x223   : > { %v1484_v61 = vsel %vm1476_vm12, %v1471_v5, %v1480_v32 }
 0x224   : > { %1488 = vst [vmem:[%s270_s26 + $0x18] sm:$0xff] %v1484_v61 }
 0x22e   : > { %v1410_v15 = vpop.f32.mrf.mxu1 }
 0x22f   : > { %v1411_v42 = vadd.f32 %v1410_v15, %v1311_v21 }
 0x231   : > { %v1431_v39 = vadd.f32 %v1430_v20, %v1411_v42 }
 0x233   : > { %vm1475_vm13 = vcmp.ge.f32.partialorder %v1431_v39, 0.0  ;;  %v1479_v62 = vmul.f32 0.1, %v1431_v39 }
 0x235   : > { %v1483_v24 = vsel %vm1475_vm13, %v1431_v39, %v1479_v62 }
 0x236   : > { %1487 = vst [vmem:[%s270_s26 + $0x10] sm:$0xff] %v1483_v24 }
 0x237   : > { %2122 = shalt.err (!%p2119_p2)
}
 0x238   : > { %1638 = dma.vmem_to_hbm [thread:$0]  (%p2373_p0), %s1504_s27, 512, %s1506_s22, %s1490_s30  }
 0x239 PF: > { %p1658_p6 = scmp.ge.s32.totalorder %s2193_s21, 2  ;;  %s1517_s15 = sand.u32 1, %s2181_s18  }
 0x23a   : > { %s1518_s6 = scalar_lea.sflag [#allocation6], %s1517_s15 }
 0x23b   : > { %p1652_p11 = pnand %p1658_p6, %p2311_p7 }
 0x23d   : > { %p1653_p12 = pneg %p1652_p11 }
 0x23f   : > { %2164 = dma.done.wait (%p1653_p12), %s1518_s6, 512  }
 0x240   : > { %2166 = vsyncadd (%p1653_p12), %s1518_s6, 4294966784  ;;  %s3203_s12 = sld [smem:[#allocation15_spill]]  ;;  %p18_p0 = scmp.ge.s32.totalorder %s2285_s23, 6  }
 0x241   : > { %s3204_s15 = smov %s2173_s16  ;;  %s3205_s16 = smov %s2177_s17 }
 0x242   : > { %s3206_s17 = smov %s2393_s9  ;;  %s3207_s18 = smov %s2185_s19 }
 0x243   : > { %s3208_s19 = smov %s2189_s20  ;;  %s3210_s21 = smov %s2285_s23 }
 0x244   :  { %20 = sbr.rel (!%p18_p0) target bundleno = 11 (0xb), region = 97 }
 0x246   : > { %s3209_s20 = smov %s3203_s12 }
 0x249   :  { %1524 = vsyncpa [#allocation5], 1 }
 0x24a   :  { %1526 = vsyncpa [#allocation5 + $0x1], 1 }
 0x24b   :  { %1527 = vsyncpa [#allocation8], 1 }
 0x24c   :  { %1529 = vsyncpa [#allocation8 + $0x1], 1 }
 0x24d   :  { %1530 = vsyncpa [#allocation6], 1 }
 0x24e   :  { %1532 = vsyncpa [#allocation6 + $0x1], 1 }

</bundles_post_ra>
